<compile_context>
chip_gen: v7x
topology: tpu7x:2x2x1
jax: 0.10.0
libtpu: 0.0.40
codegen_flags: <defaults>
</compile_context>

<pallas_src>
import jax
import jax.numpy as jnp
import numpy as np
from jax.experimental import pallas as pl
from jax.experimental.pallas import tpu as pltpu

DROPOUT_P = 0.3
LEAKY_SLOPE = 0.01  # F.leaky_relu default negative_slope

# uint32 hash / dropout constants (kept as numpy scalars so they stay uint32).
_C_ROW = np.uint32(0x01000193)
_H1 = np.uint32(0x7FEB352D)
_H2 = np.uint32(0x846CA68B)
_LAYER_SALTS = (np.uint32(0x9E3779B1), np.uint32(0x85EBCA77), np.uint32(0xC2B2AE3D))
_KEEP_THRESHOLD = np.uint32(int(round(DROPOUT_P * (1 << 32))))  # P(bits >= t) = 1-p


def _hash_u32(x):
    # lowbias32 finalizer — good mixing, pure VPU integer ops.
    x = x ^ (x >> 16)
    x = x * _H1
    x = x ^ (x >> 15)
    x = x * _H2
    x = x ^ (x >> 16)
    return x


def _round_up(x, m):
    return ((x + m - 1) // m) * m


def disc_kernel(seed_ref,                      # SMEM scalar-prefetch seed [1]
                x_ref,                         # [TB, D]      VMEM f32
                w1_ref, b1_ref,                # [D,1024] bf16, [1,1024] f32
                w2_ref, b2_ref,                # [1024,512] bf16, [1,512] f32
                w3_ref, b3_ref,                # [512,256] bf16, [1,256] f32
                w4_ref, b4_ref,                # [1,256] f32, [1,1] f32
                out_ref):                      # [TB, 1] f32
    tb = x_ref.shape[0]
    row_base = (pl.program_id(0) * tb).astype(jnp.uint32)
    seed = seed_ref[0].astype(jnp.uint32)

    inv_keep = jnp.float32(1.0 / (1.0 - DROPOUT_P))
    neg_scale = jnp.float32(LEAKY_SLOPE / (1.0 - DROPOUT_P))

    def leaky_dropout(h, salt):
        # unique counter per (global_row, col, layer) -> hash -> keep bits
        rows = jax.lax.broadcasted_iota(jnp.int32, h.shape, 0).astype(jnp.uint32)
        cols = jax.lax.broadcasted_iota(jnp.int32, h.shape, 1).astype(jnp.uint32)
        ctr = (rows + row_base) * _C_ROW + cols
        bits = _hash_u32(ctr ^ (seed + salt))
        keep = bits >= _KEEP_THRESHOLD
        # fused leaky_relu + inverted-scale dropout: one select chain + one mul
        scale = jnp.where(keep,
                          jnp.where(h >= 0.0, inv_keep, neg_scale),
                          jnp.float32(0.0))
        return h * scale

    x = x_ref[...].astype(jnp.bfloat16)

    h = jnp.dot(x, w1_ref[...], preferred_element_type=jnp.float32) + b1_ref[...]
    h = leaky_dropout(h, _LAYER_SALTS[0])

    h = jnp.dot(h.astype(jnp.bfloat16), w2_ref[...],
                preferred_element_type=jnp.float32) + b2_ref[...]
    h = leaky_dropout(h, _LAYER_SALTS[1])

    h = jnp.dot(h.astype(jnp.bfloat16), w3_ref[...],
                preferred_element_type=jnp.float32) + b3_ref[...]
    h = leaky_dropout(h, _LAYER_SALTS[2])

    # Final 256 -> 1 layer as a VPU multiply + lane reduction (no N=1 MXU drain).
    logit = jnp.sum(h * w4_ref[...], axis=-1, keepdims=True) + b4_ref[...]
    out_ref[...] = jax.nn.sigmoid(logit)


def init_params(key, input_dim):
    """Linear params; weights [in,out] (w1..w3 bf16, w4 as a [1,256] f32 row)."""
    dims = [(input_dim, 1024), (1024, 512), (512, 256), (256, 1)]
    params = []
    for i, (fan_in, fan_out) in enumerate(dims):
        key, kw, kb = jax.random.split(key, 3)
        bound = float(fan_in) ** -0.5  # mimic torch.nn.Linear uniform bound
        w = jax.random.uniform(kw, (fan_in, fan_out), jnp.float32, -bound, bound)
        b = jax.random.uniform(kb, (1, fan_out), jnp.float32, -bound, bound)
        if i < 3:
            w = w.astype(jnp.bfloat16)        # halve weight HBM traffic
        else:
            w = w.reshape(1, fan_in)          # [1,256] row for the lane reduction
        params += [w, b]
    return params


def discriminator_forward(x, params, seed):
    w1, b1, w2, b2, w3, b3, w4, b4 = params
    B, D = x.shape

    # Batch tiling: weights stay resident (constant index_map); activations tiled.
    TB = 256 if B >= 256 else _round_up(B, 8)
    B_pad = _round_up(B, TB)
    if B_pad != B:
        x = jnp.pad(x, ((0, B_pad - B), (0, 0)))
    grid = (B_pad // TB,)

    seed_arr = jnp.asarray([seed], dtype=jnp.int32)

    tile_map = lambda i, seed_ref: (i, 0)
    const_map = lambda i, seed_ref: (0, 0)

    in_specs = [
        pl.BlockSpec((TB, D), tile_map),
        pl.BlockSpec(w1.shape, const_map), pl.BlockSpec(b1.shape, const_map),
        pl.BlockSpec(w2.shape, const_map), pl.BlockSpec(b2.shape, const_map),
        pl.BlockSpec(w3.shape, const_map), pl.BlockSpec(b3.shape, const_map),
        pl.BlockSpec(w4.shape, const_map), pl.BlockSpec(b4.shape, const_map),
    ]
    out_specs = pl.BlockSpec((TB, 1), tile_map)

    flops = 2 * B_pad * (D * 1024 + 1024 * 512 + 512 * 256 + 256)
    weight_bytes = (D * 1024 + 1024 * 512 + 512 * 256) * 2 \
        + (256 + 1024 + 512 + 256 + 1) * 4
    bytes_accessed = weight_bytes + B_pad * (D + 1) * 4
    cost = pl.CostEstimate(flops=flops, transcendentals=B_pad,
                           bytes_accessed=bytes_accessed)

    out = pl.pallas_call(
        disc_kernel,
        out_shape=jax.ShapeDtypeStruct((B_pad, 1), jnp.float32),
        grid_spec=pltpu.PrefetchScalarGridSpec(
            num_scalar_prefetch=1,
            grid=grid,
            in_specs=in_specs,
            out_specs=out_specs,
        ),
        compiler_params=pltpu.CompilerParams(
            dimension_semantics=("parallel",),
        ),
        cost_estimate=cost,
    )(seed_arr, x, w1, b1, w2, b2, w3, b3, w4, b4)
    return out[:B]


if __name__ == "__main__":
    key = jax.random.PRNGKey(0)
    kx, kp = jax.random.split(key)

    batch, input_dim = 8, 64
    x = jax.random.normal(kx, (batch, input_dim), dtype=jnp.float32)
    params = init_params(kp, input_dim)

    out = discriminator_forward(x, params, seed=0)
    out = jax.block_until_ready(out)

    assert out.shape == (batch, 1)
    assert bool(jnp.all((out >= 0.0) & (out <= 1.0)))
    print("KERNEL_OK")
</pallas_src>

<mosaic_0001>
module attributes {stable_mosaic.version = 11 : i64} {
  func.func @disc_kernel(%arg0: i32, %arg1: memref<1xi32, #tpu.memory_space<smem>>, %arg2: memref<8x64xf32, #tpu.memory_space<vmem>>, %arg3: memref<64x1024xbf16, #tpu.memory_space<vmem>>, %arg4: memref<1x1024xf32, #tpu.memory_space<vmem>>, %arg5: memref<1024x512xbf16, #tpu.memory_space<vmem>>, %arg6: memref<1x512xf32, #tpu.memory_space<vmem>>, %arg7: memref<512x256xbf16, #tpu.memory_space<vmem>>, %arg8: memref<1x256xf32, #tpu.memory_space<vmem>>, %arg9: memref<1x256xf32, #tpu.memory_space<vmem>>, %arg10: memref<1x1xf32, #tpu.memory_space<vmem>>, %arg11: memref<8x1xf32, #tpu.memory_space<vmem>>) attributes {dimension_semantics = [#tpu.dimension_semantics<parallel>], iteration_bounds = array<i64: 1>, scalar_prefetch = 1 : i64, scratch_operands = 0 : i64, tpu.core_type = #tpu.core_type<tc>, window_params = [{transform_indices = @transform_0, window_bounds = array<i64: 8, 64>}, {pipeline_mode = #tpu.pipeline_mode<synchronous>, transform_indices = @transform_1, window_bounds = array<i64: 64, 1024>}, {pipeline_mode = #tpu.pipeline_mode<synchronous>, transform_indices = @transform_2, window_bounds = array<i64: 1, 1024>}, {pipeline_mode = #tpu.pipeline_mode<synchronous>, transform_indices = @transform_3, window_bounds = array<i64: 1024, 512>}, {pipeline_mode = #tpu.pipeline_mode<synchronous>, transform_indices = @transform_4, window_bounds = array<i64: 1, 512>}, {pipeline_mode = #tpu.pipeline_mode<synchronous>, transform_indices = @transform_5, window_bounds = array<i64: 512, 256>}, {pipeline_mode = #tpu.pipeline_mode<synchronous>, transform_indices = @transform_6, window_bounds = array<i64: 1, 256>}, {pipeline_mode = #tpu.pipeline_mode<synchronous>, transform_indices = @transform_7, window_bounds = array<i64: 1, 256>}, {pipeline_mode = #tpu.pipeline_mode<synchronous>, transform_indices = @transform_8, window_bounds = array<i64: 1, 1>}, {transform_indices = @transform_9, window_bounds = array<i64: 8, 1>}]} {
    %c8_i32 = arith.constant 8 : i32
    %0 = arith.muli %arg0, %c8_i32 : i32
    %c0 = arith.constant 0 : index
    %1 = memref.load %arg1[%c0] : memref<1xi32, #tpu.memory_space<smem>>
    %c0_0 = arith.constant 0 : index
    %c0_1 = arith.constant 0 : index
    %2 = vector.load %arg2[%c0_0, %c0_1] : memref<8x64xf32, #tpu.memory_space<vmem>>, vector<8x64xf32>
    %3 = arith.truncf %2 : vector<8x64xf32> to vector<8x64xbf16>
    %c0_2 = arith.constant 0 : index
    %c0_3 = arith.constant 0 : index
    %4 = vector.load %arg3[%c0_2, %c0_3] : memref<64x1024xbf16, #tpu.memory_space<vmem>>, vector<64x1024xbf16>
    %cst = arith.constant dense<0.000000e+00> : vector<8x1024xf32>
    %5 = tpu.matmul %3, %4, %cst {dimension_numbers = #tpu.dot_dimension_numbers<[1], [0], [0], [1], [0, 0, 1, 1], [], []>} : vector<8x64xbf16>, vector<64x1024xbf16>, vector<8x1024xf32> -> vector<8x1024xf32>
    %c0_4 = arith.constant 0 : index
    %c0_5 = arith.constant 0 : index
    %6 = vector.load %arg4[%c0_4, %c0_5] : memref<1x1024xf32, #tpu.memory_space<vmem>>, vector<1x1024xf32>
    %7 = vector.broadcast %6 : vector<1x1024xf32> to vector<8x1024xf32>
    %8 = arith.addf %5, %7 : vector<8x1024xf32>
    %9 = tpu.iota {dimensions = array<i32: 0>} : vector<8x1024xi32>
    %10 = tpu.iota {dimensions = array<i32: 1>} : vector<8x1024xi32>
    %11 = vector.broadcast %0 : i32 to vector<8x1024xi32>
    %12 = arith.addi %9, %11 : vector<8x1024xi32>
    %c16777619_i32 = arith.constant 16777619 : i32
    %13 = vector.broadcast %c16777619_i32 : i32 to vector<8x1024xi32>
    %14 = arith.muli %12, %13 : vector<8x1024xi32>
    %15 = arith.addi %14, %10 : vector<8x1024xi32>
    %c-1640531535_i32 = arith.constant -1640531535 : i32
    %16 = arith.addi %1, %c-1640531535_i32 : i32
    %17 = vector.broadcast %16 : i32 to vector<8x1024xi32>
    %18 = arith.xori %15, %17 : vector<8x1024xi32>
    %c16_i32 = arith.constant 16 : i32
    %19 = vector.broadcast %c16_i32 : i32 to vector<8x1024xi32>
    %20 = arith.shrui %18, %19 : vector<8x1024xi32>
    %21 = arith.xori %18, %20 : vector<8x1024xi32>
    %c2146121005_i32 = arith.constant 2146121005 : i32
    %22 = vector.broadcast %c2146121005_i32 : i32 to vector<8x1024xi32>
    %23 = arith.muli %21, %22 : vector<8x1024xi32>
    %c15_i32 = arith.constant 15 : i32
    %24 = vector.broadcast %c15_i32 : i32 to vector<8x1024xi32>
    %25 = arith.shrui %23, %24 : vector<8x1024xi32>
    %26 = arith.xori %23, %25 : vector<8x1024xi32>
    %c-2073254261_i32 = arith.constant -2073254261 : i32
    %27 = vector.broadcast %c-2073254261_i32 : i32 to vector<8x1024xi32>
    %28 = arith.muli %26, %27 : vector<8x1024xi32>
    %c16_i32_6 = arith.constant 16 : i32
    %29 = vector.broadcast %c16_i32_6 : i32 to vector<8x1024xi32>
    %30 = arith.shrui %28, %29 : vector<8x1024xi32>
    %31 = arith.xori %28, %30 : vector<8x1024xi32>
    %c1288490189_i32 = arith.constant 1288490189 : i32
    %32 = vector.broadcast %c1288490189_i32 : i32 to vector<8x1024xi32>
    %33 = arith.cmpi uge, %31, %32 : vector<8x1024xi32>
    %cst_7 = arith.constant 0.000000e+00 : f32
    %34 = vector.broadcast %cst_7 : f32 to vector<8x1024xf32>
    %35 = arith.cmpf oge, %8, %34 : vector<8x1024xf32>
    %cst_8 = arith.constant 1.42857146 : f32
    %cst_9 = arith.constant 0.0142857144 : f32
    %36 = vector.broadcast %cst_8 : f32 to vector<8x1024xf32>
    %37 = vector.broadcast %cst_9 : f32 to vector<8x1024xf32>
    %38 = arith.select %35, %36, %37 : vector<8x1024xi1>, vector<8x1024xf32>
    %cst_10 = arith.constant 0.000000e+00 : f32
    %39 = vector.broadcast %cst_10 : f32 to vector<8x1024xf32>
    %40 = arith.select %33, %38, %39 : vector<8x1024xi1>, vector<8x1024xf32>
    %41 = arith.mulf %8, %40 : vector<8x1024xf32>
    %42 = arith.truncf %41 : vector<8x1024xf32> to vector<8x1024xbf16>
    %c0_11 = arith.constant 0 : index
    %c0_12 = arith.constant 0 : index
    %43 = vector.load %arg5[%c0_11, %c0_12] : memref<1024x512xbf16, #tpu.memory_space<vmem>>, vector<1024x512xbf16>
    %cst_13 = arith.constant dense<0.000000e+00> : vector<8x512xf32>
    %44 = tpu.matmul %42, %43, %cst_13 {dimension_numbers = #tpu.dot_dimension_numbers<[1], [0], [0], [1], [0, 0, 1, 1], [], []>} : vector<8x1024xbf16>, vector<1024x512xbf16>, vector<8x512xf32> -> vector<8x512xf32>
    %c0_14 = arith.constant 0 : index
    %c0_15 = arith.constant 0 : index
    %45 = vector.load %arg6[%c0_14, %c0_15] : memref<1x512xf32, #tpu.memory_space<vmem>>, vector<1x512xf32>
    %46 = vector.broadcast %45 : vector<1x512xf32> to vector<8x512xf32>
    %47 = arith.addf %44, %46 : vector<8x512xf32>
    %48 = tpu.iota {dimensions = array<i32: 0>} : vector<8x512xi32>
    %49 = tpu.iota {dimensions = array<i32: 1>} : vector<8x512xi32>
    %50 = vector.broadcast %0 : i32 to vector<8x512xi32>
    %51 = arith.addi %48, %50 : vector<8x512xi32>
    %c16777619_i32_16 = arith.constant 16777619 : i32
    %52 = vector.broadcast %c16777619_i32_16 : i32 to vector<8x512xi32>
    %53 = arith.muli %51, %52 : vector<8x512xi32>
    %54 = arith.addi %53, %49 : vector<8x512xi32>
    %c-2048144777_i32 = arith.constant -2048144777 : i32
    %55 = arith.addi %1, %c-2048144777_i32 : i32
    %56 = vector.broadcast %55 : i32 to vector<8x512xi32>
    %57 = arith.xori %54, %56 : vector<8x512xi32>
    %c16_i32_17 = arith.constant 16 : i32
    %58 = vector.broadcast %c16_i32_17 : i32 to vector<8x512xi32>
    %59 = arith.shrui %57, %58 : vector<8x512xi32>
    %60 = arith.xori %57, %59 : vector<8x512xi32>
    %c2146121005_i32_18 = arith.constant 2146121005 : i32
    %61 = vector.broadcast %c2146121005_i32_18 : i32 to vector<8x512xi32>
    %62 = arith.muli %60, %61 : vector<8x512xi32>
    %c15_i32_19 = arith.constant 15 : i32
    %63 = vector.broadcast %c15_i32_19 : i32 to vector<8x512xi32>
    %64 = arith.shrui %62, %63 : vector<8x512xi32>
    %65 = arith.xori %62, %64 : vector<8x512xi32>
    %c-2073254261_i32_20 = arith.constant -2073254261 : i32
    %66 = vector.broadcast %c-2073254261_i32_20 : i32 to vector<8x512xi32>
    %67 = arith.muli %65, %66 : vector<8x512xi32>
    %c16_i32_21 = arith.constant 16 : i32
    %68 = vector.broadcast %c16_i32_21 : i32 to vector<8x512xi32>
    %69 = arith.shrui %67, %68 : vector<8x512xi32>
    %70 = arith.xori %67, %69 : vector<8x512xi32>
    %c1288490189_i32_22 = arith.constant 1288490189 : i32
    %71 = vector.broadcast %c1288490189_i32_22 : i32 to vector<8x512xi32>
    %72 = arith.cmpi uge, %70, %71 : vector<8x512xi32>
    %cst_23 = arith.constant 0.000000e+00 : f32
    %73 = vector.broadcast %cst_23 : f32 to vector<8x512xf32>
    %74 = arith.cmpf oge, %47, %73 : vector<8x512xf32>
    %cst_24 = arith.constant 1.42857146 : f32
    %cst_25 = arith.constant 0.0142857144 : f32
    %75 = vector.broadcast %cst_24 : f32 to vector<8x512xf32>
    %76 = vector.broadcast %cst_25 : f32 to vector<8x512xf32>
    %77 = arith.select %74, %75, %76 : vector<8x512xi1>, vector<8x512xf32>
    %cst_26 = arith.constant 0.000000e+00 : f32
    %78 = vector.broadcast %cst_26 : f32 to vector<8x512xf32>
    %79 = arith.select %72, %77, %78 : vector<8x512xi1>, vector<8x512xf32>
    %80 = arith.mulf %47, %79 : vector<8x512xf32>
    %81 = arith.truncf %80 : vector<8x512xf32> to vector<8x512xbf16>
    %c0_27 = arith.constant 0 : index
    %c0_28 = arith.constant 0 : index
    %82 = vector.load %arg7[%c0_27, %c0_28] : memref<512x256xbf16, #tpu.memory_space<vmem>>, vector<512x256xbf16>
    %cst_29 = arith.constant dense<0.000000e+00> : vector<8x256xf32>
    %83 = tpu.matmul %81, %82, %cst_29 {dimension_numbers = #tpu.dot_dimension_numbers<[1], [0], [0], [1], [0, 0, 1, 1], [], []>} : vector<8x512xbf16>, vector<512x256xbf16>, vector<8x256xf32> -> vector<8x256xf32>
    %c0_30 = arith.constant 0 : index
    %c0_31 = arith.constant 0 : index
    %84 = vector.load %arg8[%c0_30, %c0_31] : memref<1x256xf32, #tpu.memory_space<vmem>>, vector<1x256xf32>
    %85 = vector.broadcast %84 : vector<1x256xf32> to vector<8x256xf32>
    %86 = arith.addf %83, %85 : vector<8x256xf32>
    %87 = tpu.iota {dimensions = array<i32: 0>} : vector<8x256xi32>
    %88 = tpu.iota {dimensions = array<i32: 1>} : vector<8x256xi32>
    %89 = vector.broadcast %0 : i32 to vector<8x256xi32>
    %90 = arith.addi %87, %89 : vector<8x256xi32>
    %c16777619_i32_32 = arith.constant 16777619 : i32
    %91 = vector.broadcast %c16777619_i32_32 : i32 to vector<8x256xi32>
    %92 = arith.muli %90, %91 : vector<8x256xi32>
    %93 = arith.addi %92, %88 : vector<8x256xi32>
    %c-1028477379_i32 = arith.constant -1028477379 : i32
    %94 = arith.addi %1, %c-1028477379_i32 : i32
    %95 = vector.broadcast %94 : i32 to vector<8x256xi32>
    %96 = arith.xori %93, %95 : vector<8x256xi32>
    %c16_i32_33 = arith.constant 16 : i32
    %97 = vector.broadcast %c16_i32_33 : i32 to vector<8x256xi32>
    %98 = arith.shrui %96, %97 : vector<8x256xi32>
    %99 = arith.xori %96, %98 : vector<8x256xi32>
    %c2146121005_i32_34 = arith.constant 2146121005 : i32
    %100 = vector.broadcast %c2146121005_i32_34 : i32 to vector<8x256xi32>
    %101 = arith.muli %99, %100 : vector<8x256xi32>
    %c15_i32_35 = arith.constant 15 : i32
    %102 = vector.broadcast %c15_i32_35 : i32 to vector<8x256xi32>
    %103 = arith.shrui %101, %102 : vector<8x256xi32>
    %104 = arith.xori %101, %103 : vector<8x256xi32>
    %c-2073254261_i32_36 = arith.constant -2073254261 : i32
    %105 = vector.broadcast %c-2073254261_i32_36 : i32 to vector<8x256xi32>
    %106 = arith.muli %104, %105 : vector<8x256xi32>
    %c16_i32_37 = arith.constant 16 : i32
    %107 = vector.broadcast %c16_i32_37 : i32 to vector<8x256xi32>
    %108 = arith.shrui %106, %107 : vector<8x256xi32>
    %109 = arith.xori %106, %108 : vector<8x256xi32>
    %c1288490189_i32_38 = arith.constant 1288490189 : i32
    %110 = vector.broadcast %c1288490189_i32_38 : i32 to vector<8x256xi32>
    %111 = arith.cmpi uge, %109, %110 : vector<8x256xi32>
    %cst_39 = arith.constant 0.000000e+00 : f32
    %112 = vector.broadcast %cst_39 : f32 to vector<8x256xf32>
    %113 = arith.cmpf oge, %86, %112 : vector<8x256xf32>
    %cst_40 = arith.constant 1.42857146 : f32
    %cst_41 = arith.constant 0.0142857144 : f32
    %114 = vector.broadcast %cst_40 : f32 to vector<8x256xf32>
    %115 = vector.broadcast %cst_41 : f32 to vector<8x256xf32>
    %116 = arith.select %113, %114, %115 : vector<8x256xi1>, vector<8x256xf32>
    %cst_42 = arith.constant 0.000000e+00 : f32
    %117 = vector.broadcast %cst_42 : f32 to vector<8x256xf32>
    %118 = arith.select %111, %116, %117 : vector<8x256xi1>, vector<8x256xf32>
    %119 = arith.mulf %86, %118 : vector<8x256xf32>
    %c0_43 = arith.constant 0 : index
    %c0_44 = arith.constant 0 : index
    %120 = vector.load %arg9[%c0_43, %c0_44] : memref<1x256xf32, #tpu.memory_space<vmem>>, vector<1x256xf32>
    %121 = vector.broadcast %120 : vector<1x256xf32> to vector<8x256xf32>
    %122 = arith.mulf %119, %121 : vector<8x256xf32>
    %cst_45 = arith.constant dense<0.000000e+00> : vector<8xf32>
    %123 = vector.multi_reduction <add>, %122, %cst_45 [1] : vector<8x256xf32> to vector<8xf32>
    %124 = vector.shape_cast %123 : vector<8xf32> to vector<8x1xf32>
    %c0_46 = arith.constant 0 : index
    %c0_47 = arith.constant 0 : index
    %125 = vector.load %arg10[%c0_46, %c0_47] : memref<1x1xf32, #tpu.memory_space<vmem>>, vector<1x1xf32>
    %126 = vector.broadcast %125 : vector<1x1xf32> to vector<8x1xf32>
    %127 = arith.addf %124, %126 : vector<8x1xf32>
    %128 = arith.negf %127 : vector<8x1xf32>
    %129 = math.exp %128 : vector<8x1xf32>
    %cst_48 = arith.constant 1.000000e+00 : f32
    %130 = vector.broadcast %cst_48 : f32 to vector<8x1xf32>
    %131 = arith.addf %130, %129 : vector<8x1xf32>
    %132 = arith.divf %130, %131 : vector<8x1xf32>
    %c0_49 = arith.constant 0 : index
    %c0_50 = arith.constant 0 : index
    %133 = vector.load %arg11[%c0_49, %c0_50] : memref<8x1xf32, #tpu.memory_space<vmem>>, vector<8x1xf32>
    tpu.vector_store %arg11[%c0_49, %c0_50], %132 {strides = array<i32>} : memref<8x1xf32, #tpu.memory_space<vmem>>, vector<8x1xf32>,
    return
  }
  func.func @transform_0(%arg0: i32, %arg1: memref<1xi32, #tpu.memory_space<smem>>) -> (i32, i32) {
    %c0_i32 = arith.constant 0 : i32
    %c0_i32_0 = arith.constant 0 : i32
    return %arg0, %c0_i32 : i32, i32
  }
  func.func @transform_1(%arg0: i32, %arg1: memref<1xi32, #tpu.memory_space<smem>>) -> (i32, i32) {
    %c0_i32 = arith.constant 0 : i32
    %c0_i32_0 = arith.constant 0 : i32
    %c0_i32_1 = arith.constant 0 : i32
    return %c0_i32, %c0_i32_0 : i32, i32
  }
  func.func @transform_2(%arg0: i32, %arg1: memref<1xi32, #tpu.memory_space<smem>>) -> (i32, i32) {
    %c0_i32 = arith.constant 0 : i32
    %c0_i32_0 = arith.constant 0 : i32
    %c0_i32_1 = arith.constant 0 : i32
    return %c0_i32, %c0_i32_0 : i32, i32
  }
  func.func @transform_3(%arg0: i32, %arg1: memref<1xi32, #tpu.memory_space<smem>>) -> (i32, i32) {
    %c0_i32 = arith.constant 0 : i32
    %c0_i32_0 = arith.constant 0 : i32
    %c0_i32_1 = arith.constant 0 : i32
    return %c0_i32, %c0_i32_0 : i32, i32
  }
  func.func @transform_4(%arg0: i32, %arg1: memref<1xi32, #tpu.memory_space<smem>>) -> (i32, i32) {
    %c0_i32 = arith.constant 0 : i32
    %c0_i32_0 = arith.constant 0 : i32
    %c0_i32_1 = arith.constant 0 : i32
    return %c0_i32, %c0_i32_0 : i32, i32
  }
  func.func @transform_5(%arg0: i32, %arg1: memref<1xi32, #tpu.memory_space<smem>>) -> (i32, i32) {
    %c0_i32 = arith.constant 0 : i32
    %c0_i32_0 = arith.constant 0 : i32
    %c0_i32_1 = arith.constant 0 : i32
    return %c0_i32, %c0_i32_0 : i32, i32
  }
  func.func @transform_6(%arg0: i32, %arg1: memref<1xi32, #tpu.memory_space<smem>>) -> (i32, i32) {
    %c0_i32 = arith.constant 0 : i32
    %c0_i32_0 = arith.constant 0 : i32
    %c0_i32_1 = arith.constant 0 : i32
    return %c0_i32, %c0_i32_0 : i32, i32
  }
  func.func @transform_7(%arg0: i32, %arg1: memref<1xi32, #tpu.memory_space<smem>>) -> (i32, i32) {
    %c0_i32 = arith.constant 0 : i32
    %c0_i32_0 = arith.constant 0 : i32
    %c0_i32_1 = arith.constant 0 : i32
    return %c0_i32, %c0_i32_0 : i32, i32
  }
  func.func @transform_8(%arg0: i32, %arg1: memref<1xi32, #tpu.memory_space<smem>>) -> (i32, i32) {
    %c0_i32 = arith.constant 0 : i32
    %c0_i32_0 = arith.constant 0 : i32
    %c0_i32_1 = arith.constant 0 : i32
    return %c0_i32, %c0_i32_0 : i32, i32
  }
  func.func @transform_9(%arg0: i32, %arg1: memref<1xi32, #tpu.memory_space<smem>>) -> (i32, i32) {
    %c0_i32 = arith.constant 0 : i32
    %c0_i32_0 = arith.constant 0 : i32
    return %arg0, %c0_i32 : i32, i32
  }
}

</mosaic_0001>

<bundles_post_ra>
// kernel: tpu_custom_call.1
= control target key start
LH: loop header
LB: loop body
LE: loop exit
PB: predicated region body
PF: predicated region fallthrough
CT: control target
= control target key end

     0   :  { %s4427_s0 = inlined_call_operand.<no memory space> [shape: s32[1], index: 0, kind: input, shape index: {}]   ;;  %s4428_s1 = inlined_call_operand.hbm [shape: f32[8,64], index: 1, kind: input, shape index: {}]   ;;  %s4429_s2 = inlined_call_operand.hbm [shape: bf16[64,1024], index: 2, kind: input, shape index: {}]   ;;  %s4430_s3 = inlined_call_operand.vmem [shape: f32[1,1024], index: 3, kind: input, shape index: {}]   ;;  %s4431_s4 = inlined_call_operand.hbm [shape: bf16[1024,512], index: 4, kind: input, shape index: {}]   ;;  %s4432_s5 = inlined_call_operand.vmem [shape: f32[1,512], index: 5, kind: input, shape index: {}]   ;;  %s4433_s6 = inlined_call_operand.hbm [shape: bf16[512,256], index: 6, kind: input, shape index: {}]   ;;  %s4434_s7 = inlined_call_operand.vmem [shape: f32[1,256], index: 7, kind: input, shape index: {}]   ;;  %s4435_s8 = inlined_call_operand.vmem [shape: f32[1,256], index: 8, kind: input, shape index: {}]   ;;  %s4436_s9 = inlined_call_operand.<no memory space> [shape: f32[1,1], index: 9, kind: input, shape index: {}]   ;;  %s4437_s10 = inlined_call_operand.vmem [shape: f32[8,1], index: 10, kind: output, shape index: {}]  }
   0x1   :  { %v16_v0 = vstv %s4436_s9 }
   0x2   :  { %17 = vst [vmem:[#allocation4] sm:$0x1] %v16_v0 }
   0x3   :  { %18 = vsyncpa [#allocation6], 0 }
   0x4   :  { %19 = vsyncpa [#allocation8], 0 }
   0x5   :  { %20 = vsyncpa [#allocation11], 0  ;;  %s4116_s15 = smov [#allocation7]   ;;  %s4022_s19 = scalar_lea.hbm %s4429_s2, 4096 }
   0x6   :  { %s36_s16 = sshll.u32 %s4116_s15, 4  ;;  %p4023_p0 = scmp.ne.s32.totalorder %s4429_s2, %s4022_s19  ;;  %s37_s16 = int_to_ptr.vmem [resolvable:$true] %s36_s16 }
   0x7   :  { %p4026_p1 = scmp.lt.u32.totalorder %s4022_s19, %s4429_s2 }
   0x9   :  { %p4028_p2 = pnand %p4026_p1, %p4023_p0 }
   0xb   :  { %4031 = shalt.err (!%p4028_p2)
}
   0xc   :  { %s4032_s9 = scalar_lea.vmem %s37_s16, 4096  ;;  %p4037_p4 = scmp.lt.s32.totalorder %s37_s16, %s37_s16 }
   0xd   :  { %p4033_p3 = scmp.ne.s32.totalorder %s37_s16, %s4032_s9  ;;  %p4038_p5 = scmp.lt.s32.totalorder %s4032_s9, %s4032_s9 }
   0xf   :  { %p4039_p6 = por %p4038_p5, %p4037_p4 }
  0x11   :  { %p4040_p7 = pnand %p4039_p6, %p4033_p3 }
  0x13   :  { %4043 = shalt.err (!%p4040_p7)
}
  0x14   :  { %s4117_s24 = smov 512   ;;  %s4118_s25 = smov 32  }
  0x15   :  { %42 = dma.hbm_to_vmem [thread:$0]  %s4429_s2, 4096, %s37_s16, [#allocation8], %s4117_s24, %s4117_s24, %s4118_s25  }
  0x16   :  { %s4119_s28 = smov [#allocation5]   ;;  %s4120_s30 = smov [#allocation9]  }
  0x17   :  { %s27_s29 = sshll.u32 %s4119_s28, 4  ;;  %s50_s11 = sshll.u32 %s4120_s30, 4  ;;  %s28_s29 = int_to_ptr.vmem [resolvable:$true] %s27_s29  ;;  %s51_s11 = int_to_ptr.vmem [resolvable:$true] %s50_s11 }
  0x18   :  { %s4044_s14 = scalar_lea.hbm %s4428_s1, 128 }
  0x19   :  { %p4045_p8 = scmp.ne.s32.totalorder %s4428_s1, %s4044_s14  ;;  %p4048_p9 = scmp.lt.u32.totalorder %s4044_s14, %s4428_s1 }
  0x1b   :  { %p4050_p10 = pnand %p4048_p9, %p4045_p8 }
  0x1d   :  { %4053 = shalt.err (!%p4050_p10)
}
  0x1e   :  { %s4054_s2 = scalar_lea.vmem %s28_s29, 128  ;;  %p4059_p12 = scmp.lt.s32.totalorder %s28_s29, %s28_s29 }
  0x1f   :  { %p4055_p11 = scmp.ne.s32.totalorder %s28_s29, %s4054_s2  ;;  %p4060_p13 = scmp.lt.s32.totalorder %s4054_s2, %s4054_s2 }
  0x21   :  { %p4061_p0 = por %p4060_p13, %p4059_p12 }
  0x23   :  { %p4062_p1 = pnand %p4061_p0, %p4055_p11 }
  0x25   :  { %4065 = shalt.err (!%p4062_p1)
}
  0x26   :  { %30 = dma.hbm_to_vmem [thread:$0]  %s4428_s1, 128, %s28_s29, [#allocation6]  }
  0x27   :  { %s4066_s23 = scalar_lea.hbm %s4431_s4, 32768 }
  0x28   :  { %p4067_p2 = scmp.ne.s32.totalorder %s4431_s4, %s4066_s23  ;;  %p4070_p3 = scmp.lt.u32.totalorder %s4066_s23, %s4431_s4 }
  0x2a   :  { %p4072_p4 = pnand %p4070_p3, %p4067_p2 }
  0x2c   :  { %4075 = shalt.err (!%p4072_p4)
}
  0x2d   :  { %s4076_s27 = scalar_lea.vmem %s51_s11, 32768  ;;  %p4081_p6 = scmp.lt.s32.totalorder %s51_s11, %s51_s11 }
  0x2e   :  { %p4077_p5 = scmp.ne.s32.totalorder %s51_s11, %s4076_s27  ;;  %p4082_p7 = scmp.lt.s32.totalorder %s4076_s27, %s4076_s27 }
  0x30   :  { %p4083_p8 = por %p4082_p7, %p4081_p6 }
  0x32   :  { %p4084_p9 = pnand %p4083_p8, %p4077_p5 }
  0x34   :  { %4087 = shalt.err (!%p4084_p9)
}
  0x35   :  { %s4121_s1 = smov 256   ;;  %s4122_s28 = smov 16  }
  0x36   :  { %56 = dma.hbm_to_vmem [thread:$0]  %s4431_s4, 32768, %s51_s11, [#allocation8], %s4121_s1, %s4121_s1, %s4122_s28  }
  0x37   :  { %s4123_s12 = smov [#allocation10]   ;;  %s4088_s17 = scalar_lea.hbm %s4433_s6, 8192 }
  0x38   :  { %s64_s13 = sshll.u32 %s4123_s12, 4  ;;  %p4089_p10 = scmp.ne.s32.totalorder %s4433_s6, %s4088_s17  ;;  %s65_s13 = int_to_ptr.vmem [resolvable:$true] %s64_s13 }
  0x39   :  { %p4092_p11 = scmp.lt.u32.totalorder %s4088_s17, %s4433_s6 }
  0x3b   :  { %p4094_p12 = pnand %p4092_p11, %p4089_p10 }
  0x3d   :  { %4097 = shalt.err (!%p4094_p12)
}
  0x3e   :  { %s4098_s20 = scalar_lea.vmem %s65_s13, 8192  ;;  %p4103_p0 = scmp.lt.s32.totalorder %s65_s13, %s65_s13 }
  0x3f   :  { %p4099_p13 = scmp.ne.s32.totalorder %s65_s13, %s4098_s20  ;;  %p4104_p1 = scmp.lt.s32.totalorder %s4098_s20, %s4098_s20 }
  0x41   :  { %p4105_p2 = por %p4104_p1, %p4103_p0 }
  0x43   :  { %p4106_p3 = pnand %p4105_p2, %p4099_p13 }
  0x45   :  { %4109 = shalt.err (!%p4106_p3)
}
  0x46   :  { %s4124_s4 = smov 128   ;;  %s4125_s11 = smov 8  }
  0x47   :  { %70 = dma.hbm_to_vmem [thread:$0]  %s4433_s6, 8192, %s65_s13, [#allocation11], %s4124_s4, %s4124_s4, %s4125_s11  }
  0x48   :  { %4110 = dma.done.wait [#allocation6], 128  }
  0x49   :  { %4111 = vsyncadd [#allocation6], 4294967168 }
  0x4a   :  { %4112 = dma.done.wait [#allocation8], 36864  }
  0x4b   :  { %4113 = vsyncadd [#allocation8], 4294930432 }
  0x4c   :  { %4114 = dma.done.wait [#allocation11], 8192  }
  0x4d   :  { %4115 = vsyncadd [#allocation11], 4294959104  ;;  %v4126_v1 = vmov 0   ;;  %v94_v2 = vld [vmem:[#allocation7] sm:$0xff]  ;;  %v95_v4 = vld [vmem:[#allocation7 + $0x8] sm:$0xff]  ;;  %vm328_vm0 = vcmask 523264  }
  0x4e   :  { %364 = vmatprep.mubr.bf16.mxu0 %v4126_v1  ;;  %405 = vmatprep.mubr.bf16.mxu1 %v4126_v1  ;;  %v98_v3 = vld [vmem:[#allocation7 + $0x20] sm:$0xff]  ;;  %v99_v6 = vld [vmem:[#allocation7 + $0x28] sm:$0xff]  ;;  %v96_v32 = vld [vmem:[#allocation7 + $0x10] sm:$0xff]  ;;  %s518_s9 = sadd.s32 2654435761, %s4427_s0 }
  0x4f   :  { %v3137_v5 = vcombine.high %v94_v2, %v98_v3  ;;  %v3136_v7 = vcombine.low %v94_v2, %v98_v3  ;;  %v102_v8 = vld [vmem:[#allocation7 + $0x40] sm:$0xff]  ;;  %v3139_v10 = vcombine.high %v95_v4, %v99_v6  ;;  %v3138_v11 = vcombine.low %v95_v4, %v99_v6  ;;  %v103_v13 = vld [vmem:[#allocation7 + $0x48] sm:$0xff]  ;;  %v100_v33 = vld [vmem:[#allocation7 + $0x30] sm:$0xff]  ;;  %s2526_s27 = sadd.s32 2246822519, %s4427_s0 }
  0x50   :  { %v106_v9 = vld [vmem:[#allocation7 + $0x60] sm:$0xff]  ;;  %v107_v14 = vld [vmem:[#allocation7 + $0x68] sm:$0xff]  ;;  %v97_v34 = vld [vmem:[#allocation7 + $0x18] sm:$0xff]  ;;  %v3141_v39 = vcombine.high %v96_v32, %v100_v33  ;;  %v3140_v45 = vcombine.low %v96_v32, %v100_v33  ;;  %s3066_s30 = sadd.s32 3266489917, %s4427_s0 }
  0x51   :  { %v3145_v12 = vcombine.high %v102_v8, %v106_v9  ;;  %v110_v15 = vld [vmem:[#allocation7 + $0x80] sm:$0xff]  ;;  %332 = vmatprep.subr.bf16.mxu0 %v3137_v5  ;;  %v3147_v16 = vcombine.high %v103_v13, %v107_v14  ;;  %v111_v18 = vld [vmem:[#allocation7 + $0x88] sm:$0xff]  ;;  %373 = vmatprep.subr.bf16.mxu1 %v3139_v10  ;;  %v3144_v20 = vcombine.low %v102_v8, %v106_v9  ;;  %v101_v35 = vld [vmem:[#allocation7 + $0x38] sm:$0xff] }
  0x52   :  { %v114_v17 = vld [vmem:[#allocation7 + $0xa0] sm:$0xff]  ;;  %v115_v19 = vld [vmem:[#allocation7 + $0xa8] sm:$0xff]  ;;  %333 = vmatpush1.bf16.msra.mxu0 %v3136_v7  ;;  %374 = vmatpush1.bf16.msra.mxu1 %v3138_v11  ;;  %v3146_v21 = vcombine.low %v103_v13, %v107_v14  ;;  %v92_v37 = vld [vmem:[#allocation5] sm:$0xff]  ;;  %v3143_v42 = vcombine.high %v97_v34, %v101_v35  ;;  %v3142_v50 = vcombine.low %v97_v34, %v101_v35 }
  0x53   :  { %334 = vmatprep.subr.bf16.mxu0 %v3145_v12  ;;  %v3153_v22 = vcombine.high %v110_v15, %v114_v17  ;;  %375 = vmatprep.subr.bf16.mxu1 %v3147_v16  ;;  %v3155_v23 = vcombine.high %v111_v18, %v115_v19  ;;  %v118_v24 = vld [vmem:[#allocation7 + $0xc0] sm:$0xff]  ;;  %v119_v26 = vld [vmem:[#allocation7 + $0xc8] sm:$0xff]  ;;  %v3152_v28 = vcombine.low %v110_v15, %v114_v17  ;;  %v104_v40 = vld [vmem:[#allocation7 + $0x50] sm:$0xff] }
  0x54   :  { %v122_v25 = vld [vmem:[#allocation7 + $0xe0] sm:$0xff]  ;;  %v123_v27 = vld [vmem:[#allocation7 + $0xe8] sm:$0xff]  ;;  %v3154_v29 = vcombine.low %v111_v18, %v115_v19  ;;  %v108_v41 = vld [vmem:[#allocation7 + $0x70] sm:$0xff]  ;;  %v93_v43 = vpack.c.bf16 %v92_v37, %v92_v37 }
  0x55   :  { %v3161_v30 = vcombine.high %v118_v24, %v122_v25  ;;  %v3163_v31 = vcombine.high %v119_v26, %v123_v27  ;;  %v3160_v36 = vcombine.low %v118_v24, %v122_v25  ;;  %v3162_v38 = vcombine.low %v119_v26, %v123_v27  ;;  %v105_v44 = vld [vmem:[#allocation7 + $0x58] sm:$0xff]  ;;  %v112_v48 = vld [vmem:[#allocation7 + $0x90] sm:$0xff] }
  0x56   :  { %335 = vmatpush1.bf16.msra.mxu0 %v3144_v20  ;;  %376 = vmatpush1.bf16.msra.mxu1 %v3146_v21  ;;  %v109_v46 = vld [vmem:[#allocation7 + $0x78] sm:$0xff]  ;;  %v3149_v47 = vcombine.high %v104_v40, %v108_v41  ;;  %v116_v49 = vld [vmem:[#allocation7 + $0xb0] sm:$0xff]  ;;  %v3148_v53 = vcombine.low %v104_v40, %v108_v41 }
  0x57   :  { %336 = vmatprep.subr.bf16.mxu0 %v3153_v22  ;;  %377 = vmatprep.subr.bf16.mxu1 %v3155_v23  ;;  %v3151_v51 = vcombine.high %v105_v44, %v109_v46  ;;  %v113_v52 = vld [vmem:[#allocation7 + $0x98] sm:$0xff]  ;;  %v3157_v55 = vcombine.high %v112_v48, %v116_v49  ;;  %v120_v56 = vld [vmem:[#allocation7 + $0xd0] sm:$0xff]  ;;  %v3150_v58 = vcombine.low %v105_v44, %v109_v46 }
  0x58   :  { %v117_v54 = vld [vmem:[#allocation7 + $0xb8] sm:$0xff]  ;;  %v124_v57 = vld [vmem:[#allocation7 + $0xf0] sm:$0xff]  ;;  %v3156_v61 = vcombine.low %v112_v48, %v116_v49 }
  0x59   :  { %v3159_v59 = vcombine.high %v113_v52, %v117_v54  ;;  %v121_v60 = vld [vmem:[#allocation7 + $0xd8] sm:$0xff]  ;;  %v3165_v63 = vcombine.high %v120_v56, %v124_v57  ;;  %v3158_v0 = vcombine.low %v113_v52, %v117_v54  ;;  %v3164_v3 = vcombine.low %v120_v56, %v124_v57  ;;  %v3543_v4 = vld [vmem:[#allocation9 + $0x204] ss:$16 sps:$4 sm:$0xff]   ;;  %v3541_v6 = vld [vmem:[#allocation9 + $0x200] ss:$16 sps:$4 sm:$0xff]  }
  0x5a   :  { %337 = vmatpush1.bf16.msra.mxu0 %v3152_v28  ;;  %378 = vmatpush1.bf16.msra.mxu1 %v3154_v29  ;;  %v125_v62 = vld [vmem:[#allocation7 + $0xf8] sm:$0xff]  ;;  %v3549_v7 = vld [vmem:[#allocation9 + $0x224] ss:$16 sps:$4 sm:$0xff]   ;;  %v3538_v8 = vld [vmem:[#allocation9] ss:$16 sps:$4 sm:$0xff]  }
  0x5b   :  { %338 = vmatprep.subr.bf16.mxu0 %v3161_v30  ;;  %379 = vmatprep.subr.bf16.mxu1 %v3163_v31  ;;  %v3167_v2 = vcombine.high %v121_v60, %v125_v62  ;;  %v3166_v5 = vcombine.low %v121_v60, %v125_v62  ;;  %v3546_v9 = vld [vmem:[#allocation9 + $0x24] ss:$16 sps:$4 sm:$0xff]   ;;  %v3547_v10 = vld [vmem:[#allocation9 + $0x220] ss:$16 sps:$4 sm:$0xff]  }
  0x5c   :  { %v3555_v11 = vld [vmem:[#allocation9 + $0x244] ss:$16 sps:$4 sm:$0xff]   ;;  %v3544_v12 = vld [vmem:[#allocation9 + $0x20] ss:$16 sps:$4 sm:$0xff]  }
  0x5d   :  { %v3552_v13 = vld [vmem:[#allocation9 + $0x44] ss:$16 sps:$4 sm:$0xff]   ;;  %v3553_v14 = vld [vmem:[#allocation9 + $0x240] ss:$16 sps:$4 sm:$0xff]  }
  0x5e   :  { %339 = vmatpush1.bf16.msra.mxu0 %v3160_v36  ;;  %380 = vmatpush1.bf16.msra.mxu1 %v3162_v38  ;;  %v3561_v15 = vld [vmem:[#allocation9 + $0x264] ss:$16 sps:$4 sm:$0xff]   ;;  %v3550_v16 = vld [vmem:[#allocation9 + $0x40] ss:$16 sps:$4 sm:$0xff]  }
  0x5f   :  { %414 = vmatprep.subr.bf16.mxu0 %v3141_v39  ;;  %455 = vmatprep.subr.bf16.mxu1 %v3143_v42  ;;  %v3558_v17 = vld [vmem:[#allocation9 + $0x64] ss:$16 sps:$4 sm:$0xff]   ;;  %v3559_v18 = vld [vmem:[#allocation9 + $0x260] ss:$16 sps:$4 sm:$0xff]  }
  0x60   :  { %v3567_v19 = vld [vmem:[#allocation9 + $0x284] ss:$16 sps:$4 sm:$0xff]   ;;  %v3556_v20 = vld [vmem:[#allocation9 + $0x60] ss:$16 sps:$4 sm:$0xff]  }
  0x61   :  { %3168 = vmatmul.mubr.msk.bf16.vlgmr.msra.gmra.mrb[0].mxu0 %vm328_vm0, %v93_v43  ;;  %3169 = vmatmul.mubr.msk.bf16.vlgmr.msra.gmra.mrb[0].mxu1 %vm328_vm0, %v93_v43  ;;  %v3564_v21 = vld [vmem:[#allocation9 + $0x84] ss:$16 sps:$4 sm:$0xff]   ;;  %v3562_v22 = vld [vmem:[#allocation9 + $0x80] ss:$16 sps:$4 sm:$0xff]  }
  0x62   :  { %415 = vmatpush1.bf16.msra.mxu0 %v3140_v45  ;;  %446 = vmatprep.mubr.bf16.mxu0 %v4126_v1  ;;  %v3565_v23 = vld [vmem:[#allocation9 + $0x280] ss:$16 sps:$4 sm:$0xff]   ;;  %v3573_v24 = vld [vmem:[#allocation9 + $0x2a4] ss:$16 sps:$4 sm:$0xff]  }
  0x63   :  { %416 = vmatprep.subr.bf16.mxu0 %v3149_v47  ;;  %456 = vmatpush1.bf16.msra.mxu1 %v3142_v50  ;;  %v3570_v25 = vld [vmem:[#allocation9 + $0xa4] ss:$16 sps:$4 sm:$0xff]   ;;  %v3571_v26 = vld [vmem:[#allocation9 + $0x2a0] ss:$16 sps:$4 sm:$0xff]  }
  0x64   :  { %487 = vmatprep.mubr.bf16.mxu1 %v4126_v1  ;;  %457 = vmatprep.subr.bf16.mxu1 %v3151_v51  ;;  %v3540_v1 = vld [vmem:[#allocation9 + $0x4] ss:$16 sps:$4 sm:$0xff]   ;;  %v3568_v28 = vld [vmem:[#allocation9 + $0xa0] ss:$16 sps:$4 sm:$0xff]  }
  0x65   :  { %v3579_v27 = vld [vmem:[#allocation9 + $0x2c4] ss:$16 sps:$4 sm:$0xff]   ;;  %v3577_v30 = vld [vmem:[#allocation9 + $0x2c0] ss:$16 sps:$4 sm:$0xff]  }
  0x66   :  { %417 = vmatpush1.bf16.msra.mxu0 %v3148_v53  ;;  %v3576_v29 = vld [vmem:[#allocation9 + $0xc4] ss:$16 sps:$4 sm:$0xff]   ;;  %v3574_v32 = vld [vmem:[#allocation9 + $0xc0] ss:$16 sps:$4 sm:$0xff]  }
  0x67   :  { %418 = vmatprep.subr.bf16.mxu0 %v3157_v55  ;;  %458 = vmatpush1.bf16.msra.mxu1 %v3150_v58  ;;  %v3585_v31 = vld [vmem:[#allocation9 + $0x2e4] ss:$16 sps:$4 sm:$0xff]   ;;  %v3583_v34 = vld [vmem:[#allocation9 + $0x2e0] ss:$16 sps:$4 sm:$0xff]  }
  0x68   :  { %459 = vmatprep.subr.bf16.mxu1 %v3159_v59  ;;  %v3582_v33 = vld [vmem:[#allocation9 + $0xe4] ss:$16 sps:$4 sm:$0xff]   ;;  %v3580_v36 = vld [vmem:[#allocation9 + $0xe0] ss:$16 sps:$4 sm:$0xff]  }
  0x69   :  { %v3591_v35 = vld [vmem:[#allocation9 + $0x304] ss:$16 sps:$4 sm:$0xff]   ;;  %v3589_v38 = vld [vmem:[#allocation9 + $0x300] ss:$16 sps:$4 sm:$0xff]  }
  0x6a   :  { %419 = vmatpush1.bf16.msra.mxu0 %v3156_v61  ;;  %v3588_v37 = vld [vmem:[#allocation9 + $0x104] ss:$16 sps:$4 sm:$0xff]   ;;  %v3586_v40 = vld [vmem:[#allocation9 + $0x100] ss:$16 sps:$4 sm:$0xff]  }
  0x6b   :  { %420 = vmatprep.subr.bf16.mxu0 %v3165_v63  ;;  %460 = vmatpush1.bf16.msra.mxu1 %v3158_v0  ;;  %v3597_v39 = vld [vmem:[#allocation9 + $0x324] ss:$16 sps:$4 sm:$0xff]   ;;  %v3595_v42 = vld [vmem:[#allocation9 + $0x320] ss:$16 sps:$4 sm:$0xff]  }
  0x6c   :  { %461 = vmatprep.subr.bf16.mxu1 %v3167_v2  ;;  %v3594_v41 = vld [vmem:[#allocation9 + $0x124] ss:$16 sps:$4 sm:$0xff]   ;;  %v3592_v44 = vld [vmem:[#allocation9 + $0x120] ss:$16 sps:$4 sm:$0xff]  }
  0x6d   :  { %v3600_v45 = vld [vmem:[#allocation9 + $0x144] ss:$16 sps:$4 sm:$0xff]   ;;  %v3601_v46 = vld [vmem:[#allocation9 + $0x340] ss:$16 sps:$4 sm:$0xff]  }
  0x6e   :  { %421 = vmatpush1.bf16.msra.mxu0 %v3164_v3  ;;  %v3609_v47 = vld [vmem:[#allocation9 + $0x364] ss:$16 sps:$4 sm:$0xff]   ;;  %v3598_v48 = vld [vmem:[#allocation9 + $0x140] ss:$16 sps:$4 sm:$0xff]  }
  0x6f   :  { %2239 = vmatprep.subr.bf16.mxu0 %v3543_v4  ;;  %462 = vmatpush1.bf16.msra.mxu1 %v3166_v5  ;;  %v3606_v49 = vld [vmem:[#allocation9 + $0x164] ss:$16 sps:$4 sm:$0xff]   ;;  %v3607_v50 = vld [vmem:[#allocation9 + $0x360] ss:$16 sps:$4 sm:$0xff]  }
  0x70   :  { %2198 = vmatprep.subr.bf16.mxu1 %v3540_v1  ;;  %v3615_v51 = vld [vmem:[#allocation9 + $0x384] ss:$16 sps:$4 sm:$0xff]   ;;  %v3604_v52 = vld [vmem:[#allocation9 + $0x160] ss:$16 sps:$4 sm:$0xff]   ;;  %v3639_v1 = vld [vmem:[#allocation9 + $0xc] ss:$16 sps:$4 sm:$0xff]  }
  0x71   :  { %3170 = vmatmul.mubr.msk.bf16.vlgmr.msra.gmra.mrb[4].mxu0 %vm328_vm0, %v93_v43  ;;  %v3612_v53 = vld [vmem:[#allocation9 + $0x184] ss:$16 sps:$4 sm:$0xff]   ;;  %v3613_v54 = vld [vmem:[#allocation9 + $0x380] ss:$16 sps:$4 sm:$0xff]  }
  0x72   :  { %2240 = vmatpush1.bf16.msra.mxu0 %v3541_v6  ;;  %3171 = vmatmul.mubr.msk.bf16.vlgmr.msra.gmra.mrb[4].mxu1 %vm328_vm0, %v93_v43  ;;  %v3603_v43 = vld [vmem:[#allocation9 + $0x344] ss:$16 sps:$4 sm:$0xff]   ;;  %v3610_v56 = vld [vmem:[#allocation9 + $0x180] ss:$16 sps:$4 sm:$0xff]   ;;  %v128_v6 = vlaneseq }
  0x73   :  { %2241 = vmatprep.subr.bf16.mxu0 %v3549_v7  ;;  %2199 = vmatpush1.bf16.msra.mxu1 %v3538_v8  ;;  %v3621_v55 = vld [vmem:[#allocation9 + $0x3a4] ss:$16 sps:$4 sm:$0xff]   ;;  %v3619_v58 = vld [vmem:[#allocation9 + $0x3a0] ss:$16 sps:$4 sm:$0xff]  }
  0x74   :  { %2200 = vmatprep.subr.bf16.mxu1 %v3546_v9  ;;  %v3618_v57 = vld [vmem:[#allocation9 + $0x1a4] ss:$16 sps:$4 sm:$0xff]   ;;  %v3616_v59 = vld [vmem:[#allocation9 + $0x1a0] ss:$16 sps:$4 sm:$0xff]   ;;  %v4242_v7 = vshrl.u32 %v128_v6, 7  ;;  %v4244_v8 = vand.u32 127, %v128_v6 }
  0x75   :  { %v3624_v60 = vld [vmem:[#allocation9 + $0x1c4] ss:$16 sps:$4 sm:$0xff]   ;;  %v3622_v62 = vld [vmem:[#allocation9 + $0x1c0] ss:$16 sps:$4 sm:$0xff]  }
  0x76   :  { %2242 = vmatpush1.bf16.msra.mxu0 %v3547_v10  ;;  %v3627_v61 = vld [vmem:[#allocation9 + $0x3c4] ss:$16 sps:$4 sm:$0xff]   ;;  %v3625_v63 = vld [vmem:[#allocation9 + $0x3c0] ss:$16 sps:$4 sm:$0xff]   ;;  %v4247_v9 = vmul.u32 16777619, %v4242_v7 }
  0x77   :  { %2243 = vmatprep.subr.bf16.mxu0 %v3555_v11  ;;  %2201 = vmatpush1.bf16.msra.mxu1 %v3544_v12  ;;  %v3630_v0 = vld [vmem:[#allocation9 + $0x1e4] ss:$16 sps:$4 sm:$0xff]   ;;  %v3628_v2 = vld [vmem:[#allocation9 + $0x1e0] ss:$16 sps:$4 sm:$0xff]   ;;  %v500_v10 = vadd.s32 128, %v4244_v8  ;;  %v502_v11 = vadd.s32 384, %v4244_v8 }
  0x78   :  { %2202 = vmatprep.subr.bf16.mxu1 %v3552_v13  ;;  %v3631_v3 = vld [vmem:[#allocation9 + $0x3e0] ss:$16 sps:$4 sm:$0xff]   ;;  %v3633_v4 = vld [vmem:[#allocation9 + $0x3e4] ss:$16 sps:$4 sm:$0xff]   ;;  %v501_v12 = vadd.s32 256, %v4244_v8  ;;  %v4257_v13 = vadd.s32 %v4247_v9, %v4244_v8 }
  0x79   :  { %v3636_v5 = vld [vmem:[#allocation9 + $0x404] ss:$16 sps:$4 sm:$0xff]  }
  0x7a   :  { %2244 = vmatpush1.bf16.msra.mxu0 %v3553_v14  ;;  %v4259_v14 = vstv %s518_s9 }
  0x7b   :  { %2245 = vmatprep.subr.bf16.mxu0 %v3561_v15  ;;  %2203 = vmatpush1.bf16.msra.mxu1 %v3550_v16  ;;  %v4262_v15 = vadd.s32 %v4247_v9, %v500_v10  ;;  %v4265_v16 = vadd.s32 %v4247_v9, %v502_v11 }
  0x7c   :  { %2204 = vmatprep.subr.bf16.mxu1 %v3558_v17  ;;  %v4268_v17 = vadd.s32 %v4247_v9, %v501_v12 }
  0x7e   :  { %2246 = vmatpush1.bf16.msra.mxu0 %v3559_v18  ;;  %v520_v18 = vxor.u32 %v4259_v14, %v4257_v13 }
  0x7f   :  { %2247 = vmatprep.subr.bf16.mxu0 %v3567_v19  ;;  %2205 = vmatpush1.bf16.msra.mxu1 %v3556_v20  ;;  %v521_v19 = vxor.u32 %v4259_v14, %v4262_v15  ;;  %v523_v20 = vxor.u32 %v4259_v14, %v4265_v16 }
  0x80   :  { %2206 = vmatprep.subr.bf16.mxu1 %v3564_v21  ;;  %v522_v21 = vxor.u32 %v4259_v14, %v4268_v17 }
  0x82   :  { %2248 = vmatpush1.bf16.msra.mxu0 %v3565_v23  ;;  %v529_v23 = vshrl.u32 %v521_v19, 16 }
  0x83   :  { %2249 = vmatprep.subr.bf16.mxu0 %v3573_v24  ;;  %2207 = vmatpush1.bf16.msra.mxu1 %v3562_v22  ;;  %v528_v22 = vshrl.u32 %v520_v18, 16  ;;  %v531_v24 = vshrl.u32 %v523_v20, 16 }
  0x84   :  { %2208 = vmatprep.subr.bf16.mxu1 %v3570_v25  ;;  %v530_v25 = vshrl.u32 %v522_v21, 16 }
  0x86   :  { %2250 = vmatpush1.bf16.msra.mxu0 %v3571_v26  ;;  %v536_v26 = vxor.u32 %v528_v22, %v520_v18 }
  0x87   :  { %2251 = vmatprep.subr.bf16.mxu0 %v3579_v27  ;;  %2209 = vmatpush1.bf16.msra.mxu1 %v3568_v28  ;;  %v537_v27 = vxor.u32 %v529_v23, %v521_v19  ;;  %v539_v28 = vxor.u32 %v531_v24, %v523_v20 }
  0x88   :  { %2210 = vmatprep.subr.bf16.mxu1 %v3576_v29  ;;  %v538_v29 = vxor.u32 %v530_v25, %v522_v21 }
  0x8a   :  { %2252 = vmatpush1.bf16.msra.mxu0 %v3577_v30  ;;  %v504_v30 = vadd.s32 640, %v4244_v8 }
  0x8b   :  { %2253 = vmatprep.subr.bf16.mxu0 %v3585_v31  ;;  %2211 = vmatpush1.bf16.msra.mxu1 %v3574_v32  ;;  %v544_v31 = vmul.u32 2146121005, %v536_v26  ;;  %v545_v32 = vmul.u32 2146121005, %v537_v27  ;;  %v4127_v26 = vmov 0.014285714  }
  0x8c   :  { %2212 = vmatprep.subr.bf16.mxu1 %v3582_v33  ;;  %v547_v33 = vmul.u32 2146121005, %v539_v28 }
  0x8e   :  { %2254 = vmatpush1.bf16.msra.mxu0 %v3583_v34  ;;  %v546_v34 = vmul.u32 2146121005, %v538_v29 }
  0x8f   :  { %2255 = vmatprep.subr.bf16.mxu0 %v3591_v35  ;;  %2213 = vmatpush1.bf16.msra.mxu1 %v3580_v36  ;;  %v515_v35 = vadd.s32 %v4247_v9, %v504_v30  ;;  %v552_v36 = vshrl.u32 %v544_v31, 15 }
  0x90   :  { %2214 = vmatprep.subr.bf16.mxu1 %v3588_v37  ;;  %v553_v37 = vshrl.u32 %v545_v32, 15 }
  0x92   :  { %2256 = vmatpush1.bf16.msra.mxu0 %v3589_v38  ;;  %v555_v38 = vshrl.u32 %v547_v33, 15 }
  0x93   :  { %2257 = vmatprep.subr.bf16.mxu0 %v3597_v39  ;;  %2215 = vmatpush1.bf16.msra.mxu1 %v3586_v40  ;;  %v554_v39 = vshrl.u32 %v546_v34, 15  ;;  %v525_v40 = vxor.u32 %v4259_v14, %v515_v35 }
  0x94   :  { %2216 = vmatprep.subr.bf16.mxu1 %v3594_v41  ;;  %v560_v41 = vxor.u32 %v552_v36, %v544_v31 }
  0x96   :  { %2258 = vmatpush1.bf16.msra.mxu0 %v3595_v42  ;;  %v561_v42 = vxor.u32 %v553_v37, %v545_v32 }
  0x97   :  { %2259 = vmatprep.subr.bf16.mxu0 %v3603_v43  ;;  %2217 = vmatpush1.bf16.msra.mxu1 %v3592_v44  ;;  %v563_v43 = vxor.u32 %v555_v38, %v547_v33  ;;  %v562_v44 = vxor.u32 %v554_v39, %v546_v34 }
  0x98   :  { %2218 = vmatprep.subr.bf16.mxu1 %v3600_v45  ;;  %v533_v45 = vshrl.u32 %v525_v40, 16 }
  0x9a   :  { %2260 = vmatpush1.bf16.msra.mxu0 %v3601_v46  ;;  %v568_v46 = vmul.u32 2221713035, %v560_v41 }
  0x9b   :  { %2261 = vmatprep.subr.bf16.mxu0 %v3609_v47  ;;  %2219 = vmatpush1.bf16.msra.mxu1 %v3598_v48  ;;  %v569_v47 = vmul.u32 2221713035, %v561_v42  ;;  %v571_v48 = vmul.u32 2221713035, %v563_v43  ;;  %v3637_v43 = vld [vmem:[#allocation9 + $0x8] ss:$16 sps:$4 sm:$0xff]  }
  0x9c   :  { %2220 = vmatprep.subr.bf16.mxu1 %v3606_v49  ;;  %v570_v49 = vmul.u32 2221713035, %v562_v44 }
  0x9e   :  { %2262 = vmatpush1.bf16.msra.mxu0 %v3607_v50  ;;  %v541_v50 = vxor.u32 %v533_v45, %v525_v40 }
  0x9f   :  { %2263 = vmatprep.subr.bf16.mxu0 %v3615_v51  ;;  %2221 = vmatpush1.bf16.msra.mxu1 %v3604_v52  ;;  %v4282_v51 = vsub.s32 0, %v4242_v7  ;;  %v576_v52 = vshrl.u32 %v568_v46, 16 }
  0xa0   :  { %2222 = vmatprep.subr.bf16.mxu1 %v3612_v53  ;;  %v4287_v53 = vld [vmem:[%s4430_s3] sm:$0xff] }
  0xa2   :  { %2264 = vmatpush1.bf16.msra.mxu0 %v3613_v54  ;;  %v138_v54 = vsub.s32 2, %v4242_v7 }
  0xa3   :  { %2265 = vmatprep.subr.bf16.mxu0 %v3621_v55  ;;  %2223 = vmatpush1.bf16.msra.mxu1 %v3610_v56  ;;  %v4291_v55 = vsub.s32 1, %v4242_v7  ;;  %v577_v56 = vshrl.u32 %v569_v47, 16 }
  0xa4   :  { %2224 = vmatprep.subr.bf16.mxu1 %v3618_v57  ;;  %v579_v57 = vshrl.u32 %v571_v48, 16 }
  0xa6   :  { %2266 = vmatpush1.bf16.msra.mxu0 %v3619_v58  ;;  %v578_v58 = vshrl.u32 %v570_v49, 16 }
  0xa7   :  { %2225 = vmatpush1.bf16.msra.mxu1 %v3616_v59  ;;  %2267 = vmatprep.subr.bf16.mxu0 %v3627_v61  ;;  %v142_v59 = vsub.s32 3, %v4242_v7  ;;  %v131_v61 = vrot.slane %v4287_v53, %v4282_v51 }
  0xa8   :  { %2226 = vmatprep.subr.bf16.mxu1 %v3624_v60  ;;  %v549_v60 = vmul.u32 2146121005, %v541_v50 }
  0xaa   :  { %2268 = vmatpush1.bf16.msra.mxu0 %v3625_v63  ;;  %v139_v63 = vrot.slane %v4287_v53, %v138_v54 }
  0xab   :  { %2227 = vmatpush1.bf16.msra.mxu1 %v3622_v62  ;;  %2269 = vmatprep.subr.bf16.mxu0 %v3633_v4  ;;  %v584_v62 = vxor.u32 %v576_v52, %v568_v46  ;;  %v586_v4 = vxor.u32 %v578_v58, %v570_v49  ;;  %v3634_v46 = vld [vmem:[#allocation9 + $0x400] ss:$16 sps:$4 sm:$0xff]   ;;  %v3645_v49 = vld [vmem:[#allocation9 + $0x2c] ss:$16 sps:$4 sm:$0xff]   ;;  %v3643_v52 = vld [vmem:[#allocation9 + $0x28] ss:$16 sps:$4 sm:$0xff]  }
  0xac   :  { %2228 = vmatprep.subr.bf16.mxu1 %v3630_v0  ;;  %v135_v0 = vrot.slane %v4287_v53, %v4291_v55 }
  0xad   :  { %vm592_vm1 = vcmp.ge.u32.totalorder %v584_v62, 1288490189  ;;  %vm594_vm5 = vcmp.ge.u32.totalorder %v586_v4, 1288490189  ;;  %v3657_v4 = vld [vmem:[#allocation9 + $0x6c] ss:$16 sps:$4 sm:$0xff]  }
  0xae   :  { %2270 = vmatpush1.bf16.msra.mxu0 %v3631_v3  ;;  %v587_v3 = vxor.u32 %v579_v57, %v571_v48  ;;  %v3642_v48 = vld [vmem:[#allocation9 + $0x424] ss:$16 sps:$4 sm:$0xff]   ;;  %v3651_v57 = vld [vmem:[#allocation9 + $0x4c] ss:$16 sps:$4 sm:$0xff]  }
  0xaf   :  { %2229 = vmatpush1.bf16.msra.mxu1 %v3628_v2  ;;  %2280 = vmatprep.subr.bf16.mxu0 %v3636_v5  ;;  %v585_v2 = vxor.u32 %v577_v56, %v569_v47  ;;  %v143_v5 = vrot.slane %v4287_v53, %v142_v59  ;;  %v150_v47 = vsub.s32 5, %v4242_v7  ;;  %v3640_v56 = vld [vmem:[#allocation9 + $0x420] ss:$16 sps:$4 sm:$0xff]  }
  0xb0   :  { %2362 = vmatprep.subr.bf16.mxu1 %v3639_v1  ;;  %v557_v1 = vshrl.u32 %v549_v60, 15  ;;  %vm595_vm3 = vcmp.ge.u32.totalorder %v587_v3, 1288490189  ;;  %v3654_v3 = vld [vmem:[#allocation9 + $0x464] ss:$16 sps:$4 sm:$0xff]  }
  0xb1   :  { %vm593_vm2 = vcmp.ge.u32.totalorder %v585_v2, 1288490189  ;;  %v151_v58 = vrot.slane %v4287_v53, %v150_v47  ;;  %v3670_v47 = vld [vmem:[#allocation9 + $0x4c0] ss:$16 sps:$4 sm:$0xff]  }
  0xb2   :  { %v565_v25 = vxor.u32 %v557_v1, %v549_v60  ;;  %v3648_v60 = vld [vmem:[#allocation9 + $0x444] ss:$16 sps:$4 sm:$0xff]  }
  0xb4   :  { %v573_v39 = vmul.u32 2221713035, %v565_v25  ;;  %v3660_v25 = vld [vmem:[#allocation9 + $0x484] ss:$16 sps:$4 sm:$0xff]  }
  0xb6   :  { %v581_v50 = vshrl.u32 %v573_v39, 16 }
 0x134   :  { %v366_v6 = vpop.f32.mrb[0].mxu0  ;;  %v407_v11 = vpop.f32.mrb[0].mxu1 }
 0x135   :  { %v367_v10 = vadd.f32 %v366_v6, %v131_v61  ;;  %v368_v12 = vpop.f32.mrb[1].mxu0  ;;  %v408_v18 = vadd.f32 %v407_v11, %v139_v63  ;;  %v409_v20 = vpop.f32.mrb[1].mxu1  ;;  %v589_v61 = vxor.u32 %v581_v50, %v573_v39  ;;  %v3646_v63 = vld [vmem:[#allocation9 + $0x440] ss:$16 sps:$4 sm:$0xff]   ;;  %v3675_v39 = vld [vmem:[#allocation9 + $0xcc] ss:$16 sps:$4 sm:$0xff]  }
 0x136   :  { %v369_v19 = vadd.f32 %v368_v12, %v135_v0  ;;  %v370_v21 = vpop.f32.mrb[2].mxu0  ;;  %v410_v22 = vadd.f32 %v409_v20, %v143_v5  ;;  %v411_v24 = vpop.f32.mrb[2].mxu1  ;;  %v3649_v0 = vld [vmem:[#allocation9 + $0x48] ss:$16 sps:$4 sm:$0xff]   ;;  %v3678_v50 = vld [vmem:[#allocation9 + $0x4e4] ss:$16 sps:$4 sm:$0xff]  }
 0x137   :  { %vm600_vm4 = vcmp.ge.f32.partialorder %v367_v10, 0.0  ;;  %v371_v23 = vpop.f32.mrb[3].mxu0  ;;  %vm602_vm6 = vcmp.ge.f32.partialorder %v408_v18, 0.0  ;;  %v412_v28 = vpop.f32.mrb[3].mxu1  ;;  %vm597_vm9 = vcmp.ge.u32.totalorder %v589_v61, 1288490189 }
 0x138   :  { %v608_v27 = vsel %vm600_vm4, 1.4285715, %v4127_v26  ;;  %vm601_vm7 = vcmp.ge.f32.partialorder %v369_v19, 0.0  ;;  %v610_v30 = vsel %vm602_vm6, 1.4285715, %v4127_v26  ;;  %vm603_vm8 = vcmp.ge.f32.partialorder %v410_v22, 0.0 }
 0x139   :  { %v616_v29 = vsel %vm592_vm1, %v608_v27, 0.0  ;;  %v609_v31 = vsel %vm601_vm7, 1.4285715, %v4127_v26  ;;  %v618_v33 = vsel %vm594_vm5, %v610_v30, 0.0  ;;  %v611_v35 = vsel %vm603_vm8, 1.4285715, %v4127_v26 }
 0x13a   :  { %v624_v32 = vmul.f32 %v616_v29, %v367_v10  ;;  %v617_v34 = vsel %vm593_vm2, %v609_v31, 0.0  ;;  %v626_v36 = vmul.f32 %v618_v33, %v408_v18  ;;  %v619_v38 = vsel %vm595_vm3, %v611_v35, 0.0  ;;  %v3652_v21 = vld [vmem:[#allocation9 + $0x460] ss:$16 sps:$4 sm:$0xff]   ;;  %v3661_v30 = vld [vmem:[#allocation9 + $0x88] ss:$16 sps:$4 sm:$0xff]  }
 0x13b   :  { %v625_v37 = vmul.f32 %v617_v34, %v369_v19  ;;  %v627_v40 = vmul.f32 %v619_v38, %v410_v22  ;;  %v503_v10 = vadd.s32 512, %v4244_v8  ;;  %v3655_v19 = vld [vmem:[#allocation9 + $0x68] ss:$16 sps:$4 sm:$0xff]   ;;  %v3663_v22 = vld [vmem:[#allocation9 + $0x8c] ss:$16 sps:$4 sm:$0xff]   ;;  %v506_v24 = vadd.s32 896, %v4244_v8 }
 0x13c   :  { %v4311_v41 = vpack.c.bf16 %v626_v36, %v626_v36  ;;  %v4313_v44 = vpack.c.bf16 %v624_v32, %v624_v32  ;;  %v3658_v32 = vld [vmem:[#allocation9 + $0x480] ss:$16 sps:$4 sm:$0xff]   ;;  %v3669_v33 = vld [vmem:[#allocation9 + $0xac] ss:$16 sps:$4 sm:$0xff]   ;;  %v3666_v35 = vld [vmem:[#allocation9 + $0x4a4] ss:$16 sps:$4 sm:$0xff]  }
 0x13d   :  { %v633_v42 = vpack.c.bf16 %v625_v37, %v625_v37  ;;  %v4315_v45 = vpack.c.bf16 %v627_v40, %v627_v40  ;;  %v514_v27 = vadd.s32 %v4247_v9, %v503_v10  ;;  %v517_v34 = vadd.s32 %v4247_v9, %v506_v24  ;;  %v3667_v37 = vld [vmem:[#allocation9 + $0xa8] ss:$16 sps:$4 sm:$0xff]   ;;  %v3664_v38 = vld [vmem:[#allocation9 + $0x4a0] ss:$16 sps:$4 sm:$0xff]   ;;  %v3684_v61 = vld [vmem:[#allocation9 + $0x504] ss:$16 sps:$4 sm:$0xff]  }
 0x13e   :  { %v3691_v10 = vld [vmem:[#allocation9 + $0x128] ss:$16 sps:$4 sm:$0xff]   ;;  %v3694_v24 = vld [vmem:[#allocation9 + $0x540] ss:$16 sps:$4 sm:$0xff]  }
 0x13f   :  { %2230 = vmatprep.mubr.bf16.mxu1 %v633_v42  ;;  %2271 = vmatprep.mubr.bf16.mxu0 %v4315_v45  ;;  %v524_v36 = vxor.u32 %v4259_v14, %v514_v27  ;;  %v527_v40 = vxor.u32 %v4259_v14, %v517_v34  ;;  %v3700_v34 = vld [vmem:[#allocation9 + $0x560] ss:$16 sps:$4 sm:$0xff]  }
 0x140   :  { %2231 = vmatmul.mubr.bf16.vlgmr.msra.gmra.mrb[8].mxu1 %v4313_v44  ;;  %2272 = vmatmul.mubr.bf16.vlgmr.msra.gmra.mrb[8].mxu0 %v4311_v41 }
 0x141   :  { %2363 = vmatpush1.bf16.msra.mxu1 %v3637_v43  ;;  %2281 = vmatpush1.bf16.msra.mxu0 %v3634_v46  ;;  %v532_v43 = vshrl.u32 %v524_v36, 16  ;;  %v3673_v46 = vld [vmem:[#allocation9 + $0xc8] ss:$16 sps:$4 sm:$0xff]  }
 0x142   :  { %2394 = vmatprep.mubr.bf16.mxu1 %v633_v42  ;;  %2282 = vmatprep.subr.bf16.mxu0 %v3642_v48  ;;  %v3672_v42 = vld [vmem:[#allocation9 + $0x4c4] ss:$16 sps:$4 sm:$0xff]   ;;  %v3681_v48 = vld [vmem:[#allocation9 + $0xec] ss:$16 sps:$4 sm:$0xff]  }
 0x143   :  { %2364 = vmatprep.subr.bf16.mxu1 %v3645_v49  ;;  %v535_v49 = vshrl.u32 %v527_v40, 16 }
 0x144   :  { %v4322_v62 = vpop.f32.mrb[4].mxu0 }
 0x145   :  { %2365 = vmatpush1.bf16.msra.mxu1 %v3643_v52  ;;  %v450_v2 = vpop.f32.mrb[5].mxu0  ;;  %2283 = vmatpush1.bf16.msra.mxu0 %v3640_v56  ;;  %v4324_v1 = vpop.f32.mrb[4].mxu1  ;;  %v540_v52 = vxor.u32 %v532_v43, %v524_v36  ;;  %v3679_v56 = vld [vmem:[#allocation9 + $0xe8] ss:$16 sps:$4 sm:$0xff]   ;;  %v3706_v43 = vld [vmem:[#allocation9 + $0x580] ss:$16 sps:$4 sm:$0xff]  }
 0x146   :  { %2366 = vmatprep.subr.bf16.mxu1 %v3651_v57  ;;  %v451_v5 = vadd.f32 %v450_v2, %v151_v58  ;;  %v452_v6 = vpop.f32.mrb[6].mxu0  ;;  %2284 = vmatprep.subr.bf16.mxu0 %v3648_v60  ;;  %v4327_v11 = vpop.f32.mrb[5].mxu1  ;;  %v3676_v57 = vld [vmem:[#allocation9 + $0x4e0] ss:$16 sps:$4 sm:$0xff]   ;;  %v3687_v58 = vld [vmem:[#allocation9 + $0x10c] ss:$16 sps:$4 sm:$0xff]   ;;  %v543_v60 = vxor.u32 %v535_v49, %v527_v40 }
 0x147   :  { %v453_v12 = vpop.f32.mrb[7].mxu0  ;;  %v493_v18 = vpop.f32.mrb[6].mxu1  ;;  %v3682_v2 = vld [vmem:[#allocation9 + $0x500] ss:$16 sps:$4 sm:$0xff]  }
 0x148   :  { %vm605_vm10 = vcmp.ge.f32.partialorder %v451_v5, 0.0  ;;  %v494_v29 = vpop.f32.mrb[7].mxu1  ;;  %v3688_v12 = vld [vmem:[#allocation9 + $0x520] ss:$16 sps:$4 sm:$0xff]   ;;  %v3699_v18 = vld [vmem:[#allocation9 + $0x14c] ss:$16 sps:$4 sm:$0xff]  }
 0x149   :  { %2367 = vmatpush1.bf16.msra.mxu1 %v3649_v0  ;;  %v613_v20 = vsel %vm605_vm10, 1.4285715, %v4127_v26  ;;  %2285 = vmatpush1.bf16.msra.mxu0 %v3646_v63  ;;  %v548_v63 = vmul.u32 2146121005, %v540_v52  ;;  %v3685_v0 = vld [vmem:[#allocation9 + $0x108] ss:$16 sps:$4 sm:$0xff]  }
 0x14a   :  { %2368 = vmatprep.subr.bf16.mxu1 %v3657_v4  ;;  %v621_v23 = vsel %vm597_vm9, %v613_v20, 0.0  ;;  %2286 = vmatprep.subr.bf16.mxu0 %v3654_v3  ;;  %v3693_v3 = vld [vmem:[#allocation9 + $0x12c] ss:$16 sps:$4 sm:$0xff]   ;;  %v551_v4 = vmul.u32 2146121005, %v543_v60 }
 0x14b   :  { %v629_v28 = vmul.f32 %v621_v23, %v451_v5  ;;  %v3690_v5 = vld [vmem:[#allocation9 + $0x524] ss:$16 sps:$4 sm:$0xff]   ;;  %v556_v6 = vshrl.u32 %v548_v63, 15  ;;  %v3697_v23 = vld [vmem:[#allocation9 + $0x148] ss:$16 sps:$4 sm:$0xff]  }
 0x14c   :  { %v3696_v20 = vld [vmem:[#allocation9 + $0x544] ss:$16 sps:$4 sm:$0xff]   ;;  %v3715_v52 = vld [vmem:[#allocation9 + $0x1a8] ss:$16 sps:$4 sm:$0xff]  }
 0x14d   :  { %2369 = vmatpush1.bf16.msra.mxu1 %v3655_v19  ;;  %v4332_v31 = vpack.c.bf16 %v629_v28, %v629_v28  ;;  %2287 = vmatpush1.bf16.msra.mxu0 %v3652_v21  ;;  %v559_v19 = vshrl.u32 %v551_v4, 15  ;;  %v564_v21 = vxor.u32 %v556_v6, %v548_v63  ;;  %v3702_v28 = vld [vmem:[#allocation9 + $0x564] ss:$16 sps:$4 sm:$0xff]   ;;  %v3721_v63 = vld [vmem:[#allocation9 + $0x1c8] ss:$16 sps:$4 sm:$0xff]  }
 0x14e   :  { %2370 = vmatprep.subr.bf16.mxu1 %v3663_v22  ;;  %2288 = vmatprep.subr.bf16.mxu0 %v3660_v25  ;;  %v146_v22 = vsub.s32 4, %v4242_v7  ;;  %v3705_v25 = vld [vmem:[#allocation9 + $0x16c] ss:$16 sps:$4 sm:$0xff]  }
 0x14f   :  { %2312 = vmatprep.mubr.bf16.mxu0 %v4332_v31  ;;  %v567_v27 = vxor.u32 %v559_v19, %v551_v4  ;;  %v572_v29 = vmul.u32 2221713035, %v564_v21  ;;  %v3733_v21 = vld [vmem:[#allocation9 + $0x208] ss:$16 sps:$4 sm:$0xff]  }
 0x151   :  { %2371 = vmatpush1.bf16.msra.mxu1 %v3661_v30  ;;  %2289 = vmatpush1.bf16.msra.mxu0 %v3658_v32  ;;  %v158_v30 = vsub.s32 7, %v4242_v7  ;;  %v147_v32 = vrot.slane %v4287_v53, %v146_v22  ;;  %v575_v36 = vmul.u32 2221713035, %v567_v27  ;;  %v3730_v22 = vld [vmem:[#allocation9 + $0x600] ss:$16 sps:$4 sm:$0xff]  }
 0x152   :  { %2372 = vmatprep.subr.bf16.mxu1 %v3669_v33  ;;  %2290 = vmatprep.subr.bf16.mxu0 %v3666_v35  ;;  %v3703_v33 = vld [vmem:[#allocation9 + $0x168] ss:$16 sps:$4 sm:$0xff]   ;;  %v3711_v35 = vld [vmem:[#allocation9 + $0x18c] ss:$16 sps:$4 sm:$0xff]  }
 0x153   :  { %v449_v40 = vadd.f32 %v4322_v62, %v147_v32  ;;  %v3723_v62 = vld [vmem:[#allocation9 + $0x1cc] ss:$16 sps:$4 sm:$0xff]   ;;  %v3739_v27 = vld [vmem:[#allocation9 + $0x228] ss:$16 sps:$4 sm:$0xff]  }
 0x154   :  { %v3745_v32 = vld [vmem:[#allocation9 + $0x248] ss:$16 sps:$4 sm:$0xff]  }
 0x155   :  { %2373 = vmatpush1.bf16.msra.mxu1 %v3667_v37  ;;  %2291 = vmatpush1.bf16.msra.mxu0 %v3664_v38  ;;  %v3708_v37 = vld [vmem:[#allocation9 + $0x584] ss:$16 sps:$4 sm:$0xff]   ;;  %v580_v38 = vshrl.u32 %v572_v29, 16  ;;  %vm604_vm11 = vcmp.ge.f32.partialorder %v449_v40, 0.0 }
 0x156   :  { %2374 = vmatprep.subr.bf16.mxu1 %v3675_v39  ;;  %2292 = vmatprep.subr.bf16.mxu0 %v3672_v42  ;;  %v159_v39 = vrot.slane %v4287_v53, %v158_v30  ;;  %v3709_v42 = vld [vmem:[#allocation9 + $0x188] ss:$16 sps:$4 sm:$0xff]   ;;  %v612_v60 = vsel %vm604_vm11, 1.4285715, %v4127_v26  ;;  %v3744_v30 = vld [vmem:[#allocation9 + $0x644] ss:$16 sps:$4 sm:$0xff]  }
 0x157   :  { %v588_v49 = vxor.u32 %v580_v38, %v572_v29  ;;  %v3747_v29 = vld [vmem:[#allocation9 + $0x24c] ss:$16 sps:$4 sm:$0xff]   ;;  %v3756_v38 = vld [vmem:[#allocation9 + $0x684] ss:$16 sps:$4 sm:$0xff]  }
 0x159   :  { %2375 = vmatpush1.bf16.msra.mxu1 %v3673_v46  ;;  %2293 = vmatpush1.bf16.msra.mxu0 %v3670_v47  ;;  %v3717_v46 = vld [vmem:[#allocation9 + $0x1ac] ss:$16 sps:$4 sm:$0xff]   ;;  %v583_v47 = vshrl.u32 %v575_v36, 16  ;;  %vm596_vm12 = vcmp.ge.u32.totalorder %v588_v49, 1288490189 }
 0x15a   :  { %2376 = vmatprep.subr.bf16.mxu1 %v3681_v48  ;;  %2294 = vmatprep.subr.bf16.mxu0 %v3678_v50  ;;  %v3714_v48 = vld [vmem:[#allocation9 + $0x5a4] ss:$16 sps:$4 sm:$0xff]   ;;  %v492_v50 = vadd.f32 %v4327_v11, %v159_v39  ;;  %v3771_v49 = vld [vmem:[#allocation9 + $0x2cc] ss:$16 sps:$4 sm:$0xff]  }
 0x15c   :  { %vm607_vm13 = vcmp.ge.f32.partialorder %v492_v50, 0.0 }
 0x15d   :  { %2377 = vmatpush1.bf16.msra.mxu1 %v3679_v56  ;;  %2295 = vmatpush1.bf16.msra.mxu0 %v3676_v57  ;;  %v3712_v56 = vld [vmem:[#allocation9 + $0x5a0] ss:$16 sps:$4 sm:$0xff]   ;;  %v3720_v57 = vld [vmem:[#allocation9 + $0x5c4] ss:$16 sps:$4 sm:$0xff]   ;;  %v615_v11 = vsel %vm607_vm13, 1.4285715, %v4127_v26 }
 0x15e   :  { %2378 = vmatprep.subr.bf16.mxu1 %v3687_v58  ;;  %2296 = vmatprep.subr.bf16.mxu0 %v3684_v61  ;;  %v591_v58 = vxor.u32 %v583_v47, %v575_v36  ;;  %v3718_v61 = vld [vmem:[#allocation9 + $0x5c0] ss:$16 sps:$4 sm:$0xff]   ;;  %v3751_v36 = vld [vmem:[#allocation9 + $0x268] ss:$16 sps:$4 sm:$0xff]   ;;  %vm3127_vm13 = vcmask 7168  }
 0x15f   :  { %v3763_v47 = vld [vmem:[#allocation9 + $0x2a8] ss:$16 sps:$4 sm:$0xff]  }
 0x160   :  { %vm599_vm14 = vcmp.ge.u32.totalorder %v591_v58, 1288490189 }
 0x161   :  { %2379 = vmatpush1.bf16.msra.mxu1 %v3685_v0  ;;  %2297 = vmatpush1.bf16.msra.mxu0 %v3682_v2  ;;  %v3729_v0 = vld [vmem:[#allocation9 + $0x1ec] ss:$16 sps:$4 sm:$0xff]   ;;  %v620_v2 = vsel %vm596_vm12, %v612_v60, 0.0  ;;  %v623_v6 = vsel %vm599_vm14, %v615_v11, 0.0  ;;  %v3772_v60 = vld [vmem:[#allocation9 + $0x6e0] ss:$16 sps:$4 sm:$0xff]  }
 0x162   :  { %2380 = vmatprep.subr.bf16.mxu1 %v3693_v3  ;;  %2298 = vmatprep.subr.bf16.mxu0 %v3690_v5  ;;  %v3726_v3 = vld [vmem:[#allocation9 + $0x5e4] ss:$16 sps:$4 sm:$0xff]   ;;  %v628_v4 = vmul.f32 %v620_v2, %v449_v40  ;;  %v3727_v5 = vld [vmem:[#allocation9 + $0x1e8] ss:$16 sps:$4 sm:$0xff]   ;;  %v631_v19 = vmul.f32 %v623_v6, %v492_v50  ;;  %v3778_v11 = vld [vmem:[#allocation9 + $0x700] ss:$16 sps:$4 sm:$0xff]  }
 0x163   :  { %v3757_v40 = vld [vmem:[#allocation9 + $0x288] ss:$16 sps:$4 sm:$0xff]   ;;  %v3768_v50 = vld [vmem:[#allocation9 + $0x6c4] ss:$16 sps:$4 sm:$0xff]  }
 0x164   :  { %v3781_v2 = vld [vmem:[#allocation9 + $0x308] ss:$16 sps:$4 sm:$0xff]  }
 0x165   :  { %2381 = vmatpush1.bf16.msra.mxu1 %v3691_v10  ;;  %2299 = vmatpush1.bf16.msra.mxu0 %v3688_v12  ;;  %v3724_v10 = vld [vmem:[#allocation9 + $0x5e0] ss:$16 sps:$4 sm:$0xff]   ;;  %v3735_v12 = vld [vmem:[#allocation9 + $0x20c] ss:$16 sps:$4 sm:$0xff]   ;;  %v3787_v6 = vld [vmem:[#allocation9 + $0x328] ss:$16 sps:$4 sm:$0xff]  }
 0x166   :  { %2382 = vmatprep.subr.bf16.mxu1 %v3699_v18  ;;  %2300 = vmatprep.subr.bf16.mxu0 %v3696_v20  ;;  %v3732_v18 = vld [vmem:[#allocation9 + $0x604] ss:$16 sps:$4 sm:$0xff]   ;;  %v4346_v20 = vpack.c.bf16 %v628_v4, %v628_v4 }
 0x167   :  { %v3786_v4 = vld [vmem:[#allocation9 + $0x724] ss:$16 sps:$4 sm:$0xff]  }
 0x169   :  { %2383 = vmatpush1.bf16.msra.mxu1 %v3697_v23  ;;  %2301 = vmatpush1.bf16.msra.mxu0 %v3694_v24  ;;  %v3738_v23 = vld [vmem:[#allocation9 + $0x624] ss:$16 sps:$4 sm:$0xff]   ;;  %v3741_v24 = vld [vmem:[#allocation9 + $0x22c] ss:$16 sps:$4 sm:$0xff]  }
 0x16a   :  { %2384 = vmatprep.subr.bf16.mxu1 %v3705_v25  ;;  %2302 = vmatprep.subr.bf16.mxu0 %v3702_v28  ;;  %v4349_v25 = vpack.c.bf16 %v631_v19, %v631_v19  ;;  %v3736_v28 = vld [vmem:[#allocation9 + $0x620] ss:$16 sps:$4 sm:$0xff]  }
 0x16d   :  { %2385 = vmatpush1.bf16.msra.mxu1 %v3703_v33  ;;  %2303 = vmatpush1.bf16.msra.mxu0 %v3700_v34  ;;  %v3753_v33 = vld [vmem:[#allocation9 + $0x26c] ss:$16 sps:$4 sm:$0xff]   ;;  %v3750_v34 = vld [vmem:[#allocation9 + $0x664] ss:$16 sps:$4 sm:$0xff]  }
 0x16e   :  { %2386 = vmatprep.subr.bf16.mxu1 %v3711_v35  ;;  %2304 = vmatprep.subr.bf16.mxu0 %v3708_v37  ;;  %v505_v35 = vadd.s32 768, %v4244_v8  ;;  %v3759_v37 = vld [vmem:[#allocation9 + $0x28c] ss:$16 sps:$4 sm:$0xff]  }
 0x170   :  { %v516_v39 = vadd.s32 %v4247_v9, %v505_v35  ;;  %v3769_v9 = vld [vmem:[#allocation9 + $0x2c8] ss:$16 sps:$4 sm:$0xff]  }
 0x171   :  { %2387 = vmatpush1.bf16.msra.mxu1 %v3709_v42  ;;  %2305 = vmatpush1.bf16.msra.mxu0 %v3706_v43  ;;  %v3754_v42 = vld [vmem:[#allocation9 + $0x680] ss:$16 sps:$4 sm:$0xff]   ;;  %v3765_v43 = vld [vmem:[#allocation9 + $0x2ac] ss:$16 sps:$4 sm:$0xff]  }
 0x172   :  { %2388 = vmatprep.subr.bf16.mxu1 %v3717_v46  ;;  %2306 = vmatprep.subr.bf16.mxu0 %v3714_v48  ;;  %v3762_v46 = vld [vmem:[#allocation9 + $0x6a4] ss:$16 sps:$4 sm:$0xff]   ;;  %v526_v8 = vxor.u32 %v4259_v14, %v516_v39  ;;  %v3760_v48 = vld [vmem:[#allocation9 + $0x6a0] ss:$16 sps:$4 sm:$0xff]   ;;  %v3775_v14 = vld [vmem:[#allocation9 + $0x2e8] ss:$16 sps:$4 sm:$0xff]  }
 0x173   :  { %v3811_v39 = vld [vmem:[#allocation9 + $0x3a8] ss:$16 sps:$4 sm:$0xff]  }
 0x175   :  { %2389 = vmatpush1.bf16.msra.mxu1 %v3715_v52  ;;  %2307 = vmatpush1.bf16.msra.mxu0 %v3712_v56  ;;  %v534_v52 = vshrl.u32 %v526_v8, 16  ;;  %v3766_v56 = vld [vmem:[#allocation9 + $0x6c0] ss:$16 sps:$4 sm:$0xff]  }
 0x176   :  { %2390 = vmatprep.subr.bf16.mxu1 %v3723_v62  ;;  %2308 = vmatprep.subr.bf16.mxu0 %v3720_v57  ;;  %v3777_v57 = vld [vmem:[#allocation9 + $0x2ec] ss:$16 sps:$4 sm:$0xff]   ;;  %v3774_v62 = vld [vmem:[#allocation9 + $0x6e4] ss:$16 sps:$4 sm:$0xff]  }
 0x177   :  { %v542_v58 = vxor.u32 %v534_v52, %v526_v8  ;;  %v3823_v52 = vld [vmem:[#allocation9 + $0x3e8] ss:$16 sps:$4 sm:$0xff]  }
 0x179   :  { %2391 = vmatpush1.bf16.msra.mxu1 %v3721_v63  ;;  %2309 = vmatpush1.bf16.msra.mxu0 %v3718_v61  ;;  %v3783_v61 = vld [vmem:[#allocation9 + $0x30c] ss:$16 sps:$4 sm:$0xff]   ;;  %v3780_v63 = vld [vmem:[#allocation9 + $0x704] ss:$16 sps:$4 sm:$0xff]  }
 0x17a   :  { %2392 = vmatprep.subr.bf16.mxu1 %v3729_v0  ;;  %2310 = vmatprep.subr.bf16.mxu0 %v3726_v3  ;;  %v550_v0 = vmul.u32 2146121005, %v542_v58  ;;  %v3789_v3 = vld [vmem:[#allocation9 + $0x32c] ss:$16 sps:$4 sm:$0xff]  }
 0x17b   :  { %v3831_v58 = vld [vmem:[#allocation9 + $0x42c] ss:$16 sps:$4 sm:$0xff]  }
 0x17d   :  { %2393 = vmatpush1.bf16.msra.mxu1 %v3727_v5  ;;  %2311 = vmatpush1.bf16.msra.mxu0 %v3724_v10  ;;  %v558_v5 = vshrl.u32 %v550_v0, 15  ;;  %v3784_v10 = vld [vmem:[#allocation9 + $0x720] ss:$16 sps:$4 sm:$0xff]  }
 0x17e   :  { %2403 = vmatprep.subr.bf16.mxu1 %v3735_v12  ;;  %2321 = vmatprep.subr.bf16.mxu0 %v3732_v18  ;;  %v3795_v12 = vld [vmem:[#allocation9 + $0x34c] ss:$16 sps:$4 sm:$0xff]   ;;  %v3792_v18 = vld [vmem:[#allocation9 + $0x744] ss:$16 sps:$4 sm:$0xff]  }
 0x17f   :  { %v566_v19 = vxor.u32 %v558_v5, %v550_v0  ;;  %v3834_v0 = vld [vmem:[#allocation9 + $0x44c] ss:$16 sps:$4 sm:$0xff]   ;;  %v3835_v5 = vld [vmem:[#allocation9 + $0x468] ss:$16 sps:$4 sm:$0xff]  }
 0x180   :  { %2395 = vmatmul.mubr.bf16.vlgmr.msra.gmra.mrb[12].mxu1 %v4313_v44  ;;  %2313 = vmatmul.mubr.bf16.vlgmr.msra.gmra.mrb[8].mxu0 %v4346_v20  ;;  %v3742_v44 = vld [vmem:[#allocation9 + $0x640] ss:$16 sps:$4 sm:$0xff]  }
 0x181   :  { %2404 = vmatpush1.bf16.msra.mxu1 %v3733_v21  ;;  %2322 = vmatpush1.bf16.msra.mxu0 %v3730_v22  ;;  %v154_v21 = vsub.s32 6, %v4242_v7  ;;  %v3793_v22 = vld [vmem:[#allocation9 + $0x348] ss:$16 sps:$4 sm:$0xff]  }
 0x182   :  { %2435 = vmatprep.mubr.bf16.mxu1 %v4315_v45  ;;  %2323 = vmatprep.subr.bf16.mxu0 %v3738_v23  ;;  %v3748_v45 = vld [vmem:[#allocation9 + $0x660] ss:$16 sps:$4 sm:$0xff]  }
 0x183   :  { %2405 = vmatprep.subr.bf16.mxu1 %v3741_v24  ;;  %2353 = vmatprep.mubr.bf16.mxu0 %v4349_v25  ;;  %v3790_v23 = vld [vmem:[#allocation9 + $0x740] ss:$16 sps:$4 sm:$0xff]   ;;  %v3801_v24 = vld [vmem:[#allocation9 + $0x36c] ss:$16 sps:$4 sm:$0xff]  }
 0x185   :  { %2406 = vmatpush1.bf16.msra.mxu1 %v3739_v27  ;;  %2324 = vmatpush1.bf16.msra.mxu0 %v3736_v28  ;;  %v3798_v27 = vld [vmem:[#allocation9 + $0x764] ss:$16 sps:$4 sm:$0xff]   ;;  %v574_v28 = vmul.u32 2221713035, %v566_v19  ;;  %v3843_v19 = vld [vmem:[#allocation9 + $0x4ac] ss:$16 sps:$4 sm:$0xff]  }
 0x186   :  { %2407 = vmatprep.subr.bf16.mxu1 %v3747_v29  ;;  %2325 = vmatprep.subr.bf16.mxu0 %v3744_v30  ;;  %v155_v29 = vrot.slane %v4287_v53, %v154_v21  ;;  %v3799_v30 = vld [vmem:[#allocation9 + $0x368] ss:$16 sps:$4 sm:$0xff]   ;;  %v3810_v53 = vld [vmem:[#allocation9 + $0x7a4] ss:$16 sps:$4 sm:$0xff]  }
 0x187   :  { %v3934_v21 = vld [vmem:[#allocation10 + $0x40] ss:$8 sps:$4 sm:$0xff]  }
 0x188   :  { %v490_v35 = vadd.f32 %v4324_v1, %v155_v29  ;;  %v3816_v1 = vld [vmem:[#allocation9 + $0x7c4] ss:$16 sps:$4 sm:$0xff]  }
 0x189   :  { %2408 = vmatpush1.bf16.msra.mxu1 %v3745_v32  ;;  %2326 = vmatpush1.bf16.msra.mxu0 %v3742_v44  ;;  %v3796_v32 = vld [vmem:[#allocation9 + $0x760] ss:$16 sps:$4 sm:$0xff]   ;;  %v3807_v44 = vld [vmem:[#allocation9 + $0x38c] ss:$16 sps:$4 sm:$0xff]  }
 0x18a   :  { %2409 = vmatprep.subr.bf16.mxu1 %v3753_v33  ;;  %2327 = vmatprep.subr.bf16.mxu0 %v3750_v34  ;;  %v3804_v33 = vld [vmem:[#allocation9 + $0x784] ss:$16 sps:$4 sm:$0xff]   ;;  %v582_v34 = vshrl.u32 %v574_v28, 16  ;;  %vm606_vm15 = vcmp.ge.f32.partialorder %v490_v35, 0.0 }
 0x18b   :  { %v3942_v29 = vld [vmem:[#allocation10 + $0x64] ss:$8 sps:$4 sm:$0xff]  }
 0x18d   :  { %2410 = vmatpush1.bf16.msra.mxu1 %v3751_v36  ;;  %2328 = vmatpush1.bf16.msra.mxu0 %v3748_v45  ;;  %v3805_v36 = vld [vmem:[#allocation9 + $0x388] ss:$16 sps:$4 sm:$0xff]   ;;  %v3802_v45 = vld [vmem:[#allocation9 + $0x780] ss:$16 sps:$4 sm:$0xff]  }
 0x18e   :  { %2411 = vmatprep.subr.bf16.mxu1 %v3759_v37  ;;  %2329 = vmatprep.subr.bf16.mxu0 %v3756_v38  ;;  %v3813_v37 = vld [vmem:[#allocation9 + $0x3ac] ss:$16 sps:$4 sm:$0xff]   ;;  %v590_v38 = vxor.u32 %v582_v34, %v574_v28  ;;  %v3844_v28 = vld [vmem:[#allocation9 + $0x4c8] ss:$16 sps:$4 sm:$0xff]  }
 0x18f   :  { %v3852_v34 = vld [vmem:[#allocation9 + $0x50c] ss:$16 sps:$4 sm:$0xff]  }
 0x190   :  { %vm598_vm0 = vcmp.ge.u32.totalorder %v590_v38, 1288490189  ;;  %v3946_v38 = vld [vmem:[#allocation10 + $0x80] ss:$8 sps:$4 sm:$0xff]  }
 0x191   :  { %2412 = vmatpush1.bf16.msra.mxu1 %v3757_v40  ;;  %2330 = vmatpush1.bf16.msra.mxu0 %v3754_v42  ;;  %v3808_v40 = vld [vmem:[#allocation9 + $0x7a0] ss:$16 sps:$4 sm:$0xff]   ;;  %v3819_v42 = vld [vmem:[#allocation9 + $0x3cc] ss:$16 sps:$4 sm:$0xff]  }
 0x192   :  { %2413 = vmatprep.subr.bf16.mxu1 %v3765_v43  ;;  %2331 = vmatprep.subr.bf16.mxu0 %v3762_v46  ;;  %v614_v43 = vsel %vm606_vm15, 1.4285715, %v4127_v26  ;;  %v3817_v46 = vld [vmem:[#allocation9 + $0x3c8] ss:$16 sps:$4 sm:$0xff]  }
 0x193   :  { %v622_v8 = vsel %vm598_vm0, %v614_v43, 0.0  ;;  %v3856_v43 = vld [vmem:[#allocation9 + $0x548] ss:$16 sps:$4 sm:$0xff]  }
 0x195   :  { %2414 = vmatpush1.bf16.msra.mxu1 %v3763_v47  ;;  %2332 = vmatpush1.bf16.msra.mxu0 %v3760_v48  ;;  %v3814_v47 = vld [vmem:[#allocation9 + $0x7c0] ss:$16 sps:$4 sm:$0xff]   ;;  %v3825_v48 = vld [vmem:[#allocation9 + $0x3ec] ss:$16 sps:$4 sm:$0xff]  }
 0x196   :  { %2415 = vmatprep.subr.bf16.mxu1 %v3771_v49  ;;  %2333 = vmatprep.subr.bf16.mxu0 %v3768_v50  ;;  %v3822_v49 = vld [vmem:[#allocation9 + $0x7e4] ss:$16 sps:$4 sm:$0xff]   ;;  %v630_v50 = vmul.f32 %v622_v8, %v490_v35  ;;  %v3943_v35 = vld [vmem:[#allocation10 + $0x70] ss:$8 sps:$4 sm:$0xff]   ;;  %v3952_v8 = vld [vmem:[#allocation10 + $0xa0] ss:$8 sps:$4 sm:$0xff]  }
 0x199   :  { %2416 = vmatpush1.bf16.msra.mxu1 %v3769_v9  ;;  %2334 = vmatpush1.bf16.msra.mxu0 %v3766_v56  ;;  %v3820_v9 = vld [vmem:[#allocation9 + $0x7e0] ss:$16 sps:$4 sm:$0xff]   ;;  %v3828_v56 = vld [vmem:[#allocation9 + $0x40c] ss:$16 sps:$4 sm:$0xff]  }
 0x19a   :  { %2417 = vmatprep.subr.bf16.mxu1 %v3777_v57  ;;  %2335 = vmatprep.subr.bf16.mxu0 %v3774_v62  ;;  %v4361_v57 = vpack.c.bf16 %v630_v50, %v630_v50  ;;  %v3826_v62 = vld [vmem:[#allocation9 + $0x408] ss:$16 sps:$4 sm:$0xff]  }
 0x19b   :  { %v3955_v50 = vld [vmem:[#allocation10 + $0xb0] ss:$8 sps:$4 sm:$0xff]  }
 0x19d   :  { %2418 = vmatpush1.bf16.msra.mxu1 %v3775_v14  ;;  %2336 = vmatpush1.bf16.msra.mxu0 %v3772_v60  ;;  %v3922_v14 = vld [vmem:[#allocation10] ss:$8 sps:$4 sm:$0xff]   ;;  %v3924_v60 = vld [vmem:[#allocation10 + $0x4] ss:$8 sps:$4 sm:$0xff]  }
 0x19e   :  { %2419 = vmatprep.subr.bf16.mxu1 %v3783_v61  ;;  %2337 = vmatprep.subr.bf16.mxu0 %v3780_v63  ;;  %v3829_v61 = vld [vmem:[#allocation9 + $0x428] ss:$16 sps:$4 sm:$0xff]   ;;  %v3927_v63 = vld [vmem:[#allocation10 + $0x14] ss:$8 sps:$4 sm:$0xff]  }
 0x1a1   :  { %2420 = vmatpush1.bf16.msra.mxu1 %v3781_v2  ;;  %2338 = vmatpush1.bf16.msra.mxu0 %v3778_v11  ;;  %v3925_v2 = vld [vmem:[#allocation10 + $0x10] ss:$8 sps:$4 sm:$0xff]  }
 0x1a2   :  { %2421 = vmatprep.subr.bf16.mxu1 %v3789_v3  ;;  %2339 = vmatprep.subr.bf16.mxu0 %v3786_v4  ;;  %v3832_v11 = vld [vmem:[#allocation9 + $0x448] ss:$16 sps:$4 sm:$0xff]   ;;  %v3930_v3 = vld [vmem:[#allocation10 + $0x24] ss:$8 sps:$4 sm:$0xff]  }
 0x1a3   :  { %v3928_v4 = vld [vmem:[#allocation10 + $0x20] ss:$8 sps:$4 sm:$0xff]  }
 0x1a5   :  { %2422 = vmatpush1.bf16.msra.mxu1 %v3787_v6  ;;  %2340 = vmatpush1.bf16.msra.mxu0 %v3784_v10  ;;  %v3933_v6 = vld [vmem:[#allocation10 + $0x34] ss:$8 sps:$4 sm:$0xff]  }
 0x1a6   :  { %2423 = vmatprep.subr.bf16.mxu1 %v3795_v12  ;;  %2341 = vmatprep.subr.bf16.mxu0 %v3792_v18  ;;  %v3840_v10 = vld [vmem:[#allocation9 + $0x48c] ss:$16 sps:$4 sm:$0xff]   ;;  %v3838_v12 = vld [vmem:[#allocation9 + $0x488] ss:$16 sps:$4 sm:$0xff]  }
 0x1a7   :  { %v3936_v18 = vld [vmem:[#allocation10 + $0x44] ss:$8 sps:$4 sm:$0xff]  }
 0x1a9   :  { %2424 = vmatpush1.bf16.msra.mxu1 %v3793_v22  ;;  %2342 = vmatpush1.bf16.msra.mxu0 %v3790_v23  ;;  %v3841_v22 = vld [vmem:[#allocation9 + $0x4a8] ss:$16 sps:$4 sm:$0xff]   ;;  %v3939_v23 = vld [vmem:[#allocation10 + $0x54] ss:$8 sps:$4 sm:$0xff]  }
 0x1aa   :  { %2425 = vmatprep.subr.bf16.mxu1 %v3801_v24  ;;  %2343 = vmatprep.subr.bf16.mxu0 %v3798_v27  ;;  %v3846_v24 = vld [vmem:[#allocation9 + $0x4cc] ss:$16 sps:$4 sm:$0xff]   ;;  %v3937_v27 = vld [vmem:[#allocation10 + $0x50] ss:$8 sps:$4 sm:$0xff]  }
 0x1ad   :  { %2426 = vmatpush1.bf16.msra.mxu1 %v3799_v30  ;;  %2344 = vmatpush1.bf16.msra.mxu0 %v3796_v32  ;;  %v3849_v30 = vld [vmem:[#allocation9 + $0x4ec] ss:$16 sps:$4 sm:$0xff]   ;;  %v3940_v32 = vld [vmem:[#allocation10 + $0x60] ss:$8 sps:$4 sm:$0xff]  }
 0x1ae   :  { %2427 = vmatprep.subr.bf16.mxu1 %v3807_v44  ;;  %2345 = vmatprep.subr.bf16.mxu0 %v3804_v33  ;;  %v3847_v44 = vld [vmem:[#allocation9 + $0x4e8] ss:$16 sps:$4 sm:$0xff]   ;;  %v3945_v33 = vld [vmem:[#allocation10 + $0x74] ss:$8 sps:$4 sm:$0xff]  }
 0x1b1   :  { %2428 = vmatpush1.bf16.msra.mxu1 %v3805_v36  ;;  %2346 = vmatpush1.bf16.msra.mxu0 %v3802_v45  ;;  %v3850_v36 = vld [vmem:[#allocation9 + $0x508] ss:$16 sps:$4 sm:$0xff]   ;;  %v3948_v45 = vld [vmem:[#allocation10 + $0x84] ss:$8 sps:$4 sm:$0xff]  }
 0x1b2   :  { %2429 = vmatprep.subr.bf16.mxu1 %v3813_v37  ;;  %2347 = vmatprep.subr.bf16.mxu0 %v3810_v53  ;;  %v3855_v37 = vld [vmem:[#allocation9 + $0x52c] ss:$16 sps:$4 sm:$0xff]   ;;  %v3853_v53 = vld [vmem:[#allocation9 + $0x528] ss:$16 sps:$4 sm:$0xff]  }
 0x1b5   :  { %2430 = vmatpush1.bf16.msra.mxu1 %v3811_v39  ;;  %2348 = vmatpush1.bf16.msra.mxu0 %v3808_v40  ;;  %v3951_v39 = vld [vmem:[#allocation10 + $0x94] ss:$8 sps:$4 sm:$0xff]  }
 0x1b6   :  { %2431 = vmatprep.subr.bf16.mxu1 %v3819_v42  ;;  %2349 = vmatprep.subr.bf16.mxu0 %v3816_v1  ;;  %v3858_v40 = vld [vmem:[#allocation9 + $0x54c] ss:$16 sps:$4 sm:$0xff]   ;;  %v3949_v42 = vld [vmem:[#allocation10 + $0x90] ss:$8 sps:$4 sm:$0xff]  }
 0x1b7   :  { %v3954_v1 = vld [vmem:[#allocation10 + $0xa4] ss:$8 sps:$4 sm:$0xff]  }
 0x1b9   :  { %2432 = vmatpush1.bf16.msra.mxu1 %v3817_v46  ;;  %2350 = vmatpush1.bf16.msra.mxu0 %v3814_v47  ;;  %v3861_v46 = vld [vmem:[#allocation9 + $0x56c] ss:$16 sps:$4 sm:$0xff]   ;;  %v3859_v47 = vld [vmem:[#allocation9 + $0x568] ss:$16 sps:$4 sm:$0xff]  }
 0x1ba   :  { %2433 = vmatprep.subr.bf16.mxu1 %v3825_v48  ;;  %2351 = vmatprep.subr.bf16.mxu0 %v3822_v49  ;;  %v3957_v48 = vld [vmem:[#allocation10 + $0xb4] ss:$8 sps:$4 sm:$0xff]  }
 0x1bb   :  { %v3864_v49 = vld [vmem:[#allocation9 + $0x58c] ss:$16 sps:$4 sm:$0xff]  }
 0x1bd   :  { %2434 = vmatpush1.bf16.msra.mxu1 %v3823_v52  ;;  %2352 = vmatpush1.bf16.msra.mxu0 %v3820_v9  ;;  %v3862_v52 = vld [vmem:[#allocation9 + $0x588] ss:$16 sps:$4 sm:$0xff]   ;;  %v3960_v9 = vld [vmem:[#allocation10 + $0xc4] ss:$8 sps:$4 sm:$0xff]  }
 0x1be   :  { %2444 = vmatprep.subr.bf16.mxu1 %v3828_v56  ;;  %2984 = vmatprep.subr.bf16.mxu0 %v3924_v60  ;;  %v3867_v56 = vld [vmem:[#allocation9 + $0x5ac] ss:$16 sps:$4 sm:$0xff]   ;;  %v3868_v60 = vld [vmem:[#allocation9 + $0x5c8] ss:$16 sps:$4 sm:$0xff]  }
 0x1c0   :  { %2436 = vmatmul.mubr.bf16.vlgmr.msra.gmra.mrb[12].mxu1 %v4311_v41  ;;  %2354 = vmatmul.mubr.bf16.vlgmr.msra.gmra.mrb[8].mxu0 %v4361_v57  ;;  %v3837_v41 = vld [vmem:[#allocation9 + $0x46c] ss:$16 sps:$4 sm:$0xff]  }
 0x1c1   :  { %2445 = vmatpush1.bf16.msra.mxu1 %v3826_v62  ;;  %2476 = vmatprep.mubr.bf16.mxu1 %v4332_v31  ;;  %v3931_v31 = vld [vmem:[#allocation10 + $0x30] ss:$8 sps:$4 sm:$0xff]   ;;  %v3958_v62 = vld [vmem:[#allocation10 + $0xc0] ss:$8 sps:$4 sm:$0xff]  }
 0x1c2   :  { %2446 = vmatprep.subr.bf16.mxu1 %v3831_v58  ;;  %2985 = vmatpush1.bf16.msra.mxu0 %v3922_v14  ;;  %v3865_v58 = vld [vmem:[#allocation9 + $0x5a8] ss:$16 sps:$4 sm:$0xff]   ;;  %v3870_v14 = vld [vmem:[#allocation9 + $0x5cc] ss:$16 sps:$4 sm:$0xff]  }
 0x1c3   :  { %2986 = vmatprep.subr.bf16.mxu0 %v3927_v63  ;;  %v3871_v63 = vld [vmem:[#allocation9 + $0x5e8] ss:$16 sps:$4 sm:$0xff]  }
 0x1c5   :  { %2447 = vmatpush1.bf16.msra.mxu1 %v3829_v61  ;;  %v3873_v61 = vld [vmem:[#allocation9 + $0x5ec] ss:$16 sps:$4 sm:$0xff]  }
 0x1c6   :  { %2448 = vmatprep.subr.bf16.mxu1 %v3834_v0  ;;  %2987 = vmatpush1.bf16.msra.mxu0 %v3925_v2  ;;  %v3876_v0 = vld [vmem:[#allocation9 + $0x60c] ss:$16 sps:$4 sm:$0xff]   ;;  %v3874_v2 = vld [vmem:[#allocation9 + $0x608] ss:$16 sps:$4 sm:$0xff]  }
 0x1c7   :  { %2988 = vmatprep.subr.bf16.mxu0 %v3930_v3  ;;  %v3877_v3 = vld [vmem:[#allocation9 + $0x628] ss:$16 sps:$4 sm:$0xff]  }
 0x1c9   :  { %2449 = vmatpush1.bf16.msra.mxu1 %v3832_v11  ;;  %v3879_v11 = vld [vmem:[#allocation9 + $0x62c] ss:$16 sps:$4 sm:$0xff]  }
 0x1ca   :  { %2450 = vmatprep.subr.bf16.mxu1 %v3837_v41  ;;  %2989 = vmatpush1.bf16.msra.mxu0 %v3928_v4  ;;  %v3882_v41 = vld [vmem:[#allocation9 + $0x64c] ss:$16 sps:$4 sm:$0xff]   ;;  %v3880_v4 = vld [vmem:[#allocation9 + $0x648] ss:$16 sps:$4 sm:$0xff]  }
 0x1cb   :  { %2990 = vmatprep.subr.bf16.mxu0 %v3933_v6  ;;  %v3883_v6 = vld [vmem:[#allocation9 + $0x668] ss:$16 sps:$4 sm:$0xff]  }
 0x1cd   :  { %2451 = vmatpush1.bf16.msra.mxu1 %v3835_v5  ;;  %v3885_v5 = vld [vmem:[#allocation9 + $0x66c] ss:$16 sps:$4 sm:$0xff]  }
 0x1ce   :  { %2452 = vmatprep.subr.bf16.mxu1 %v3840_v10  ;;  %2991 = vmatpush1.bf16.msra.mxu0 %v3931_v31  ;;  %v3888_v10 = vld [vmem:[#allocation9 + $0x68c] ss:$16 sps:$4 sm:$0xff]   ;;  %v3886_v31 = vld [vmem:[#allocation9 + $0x688] ss:$16 sps:$4 sm:$0xff]  }
 0x1cf   :  { %2992 = vmatprep.subr.bf16.mxu0 %v3936_v18  ;;  %v3894_v18 = vld [vmem:[#allocation9 + $0x6cc] ss:$16 sps:$4 sm:$0xff]  }
 0x1d1   :  { %2453 = vmatpush1.bf16.msra.mxu1 %v3838_v12  ;;  %v3891_v12 = vld [vmem:[#allocation9 + $0x6ac] ss:$16 sps:$4 sm:$0xff]  }
 0x1d2   :  { %2454 = vmatprep.subr.bf16.mxu1 %v3843_v19  ;;  %2993 = vmatpush1.bf16.msra.mxu0 %v3934_v21  ;;  %v3961_v21 = vld [vmem:[#allocation10 + $0xd0] ss:$8 sps:$4 sm:$0xff]  }
 0x1d3   :  { %2994 = vmatprep.subr.bf16.mxu0 %v3939_v23 }
 0x1d5   :  { %2455 = vmatpush1.bf16.msra.mxu1 %v3841_v22 }
 0x1d6   :  { %2456 = vmatprep.subr.bf16.mxu1 %v3846_v24  ;;  %2995 = vmatpush1.bf16.msra.mxu0 %v3937_v27  ;;  %v3892_v24 = vld [vmem:[#allocation9 + $0x6c8] ss:$16 sps:$4 sm:$0xff]  }
 0x1d7   :  { %2996 = vmatprep.subr.bf16.mxu0 %v3942_v29  ;;  %v3966_v29 = vld [vmem:[#allocation10 + $0xe4] ss:$8 sps:$4 sm:$0xff]  }
 0x1d9   :  { %2457 = vmatpush1.bf16.msra.mxu1 %v3844_v28  ;;  %v3897_v28 = vld [vmem:[#allocation9 + $0x6ec] ss:$16 sps:$4 sm:$0xff]  }
 0x1da   :  { %2458 = vmatprep.subr.bf16.mxu1 %v3849_v30  ;;  %2997 = vmatpush1.bf16.msra.mxu0 %v3940_v32  ;;  %v3964_v30 = vld [vmem:[#allocation10 + $0xe0] ss:$8 sps:$4 sm:$0xff]  }
 0x1db   :  { %2998 = vmatprep.subr.bf16.mxu0 %v3945_v33  ;;  %v3895_v32 = vld [vmem:[#allocation9 + $0x6e8] ss:$16 sps:$4 sm:$0xff]   ;;  %v3969_v33 = vld [vmem:[#allocation10 + $0xf4] ss:$8 sps:$4 sm:$0xff]  }
 0x1dd   :  { %2459 = vmatpush1.bf16.msra.mxu1 %v3847_v44  ;;  %v3900_v44 = vld [vmem:[#allocation9 + $0x70c] ss:$16 sps:$4 sm:$0xff]  }
 0x1de   :  { %2460 = vmatprep.subr.bf16.mxu1 %v3852_v34  ;;  %2999 = vmatpush1.bf16.msra.mxu0 %v3943_v35  ;;  %v3967_v34 = vld [vmem:[#allocation10 + $0xf0] ss:$8 sps:$4 sm:$0xff]  }
 0x1df   :  { %3000 = vmatprep.subr.bf16.mxu0 %v3948_v45  ;;  %v3898_v35 = vld [vmem:[#allocation9 + $0x708] ss:$16 sps:$4 sm:$0xff]   ;;  %v3972_v45 = vld [vmem:[#allocation10 + $0x104] ss:$8 sps:$4 sm:$0xff]  }
 0x1e1   :  { %2461 = vmatpush1.bf16.msra.mxu1 %v3850_v36  ;;  %v3903_v36 = vld [vmem:[#allocation9 + $0x72c] ss:$16 sps:$4 sm:$0xff]  }
 0x1e2   :  { %2462 = vmatprep.subr.bf16.mxu1 %v3855_v37  ;;  %3001 = vmatpush1.bf16.msra.mxu0 %v3946_v38  ;;  %v3901_v37 = vld [vmem:[#allocation9 + $0x728] ss:$16 sps:$4 sm:$0xff]   ;;  %v3906_v38 = vld [vmem:[#allocation9 + $0x74c] ss:$16 sps:$4 sm:$0xff]  }
 0x1e3   :  { %3002 = vmatprep.subr.bf16.mxu0 %v3951_v39  ;;  %v3909_v39 = vld [vmem:[#allocation9 + $0x76c] ss:$16 sps:$4 sm:$0xff]  }
 0x1e5   :  { %2463 = vmatpush1.bf16.msra.mxu1 %v3853_v53  ;;  %v3904_v53 = vld [vmem:[#allocation9 + $0x748] ss:$16 sps:$4 sm:$0xff]  }
 0x1e6   :  { %2464 = vmatprep.subr.bf16.mxu1 %v3858_v40  ;;  %3003 = vmatpush1.bf16.msra.mxu0 %v3949_v42  ;;  %v3907_v40 = vld [vmem:[#allocation9 + $0x768] ss:$16 sps:$4 sm:$0xff]   ;;  %v3912_v42 = vld [vmem:[#allocation9 + $0x78c] ss:$16 sps:$4 sm:$0xff]  }
 0x1e7   :  { %3004 = vmatprep.subr.bf16.mxu0 %v3954_v1  ;;  %v3915_v1 = vld [vmem:[#allocation9 + $0x7ac] ss:$16 sps:$4 sm:$0xff]  }
 0x1e9   :  { %2465 = vmatpush1.bf16.msra.mxu1 %v3856_v43  ;;  %v3910_v43 = vld [vmem:[#allocation9 + $0x788] ss:$16 sps:$4 sm:$0xff]  }
 0x1ea   :  { %2466 = vmatprep.subr.bf16.mxu1 %v3861_v46  ;;  %3005 = vmatpush1.bf16.msra.mxu0 %v3952_v8  ;;  %v3913_v46 = vld [vmem:[#allocation9 + $0x7a8] ss:$16 sps:$4 sm:$0xff]   ;;  %v3918_v8 = vld [vmem:[#allocation9 + $0x7cc] ss:$16 sps:$4 sm:$0xff]  }
 0x1eb   :  { %3006 = vmatprep.subr.bf16.mxu0 %v3957_v48  ;;  %v3921_v48 = vld [vmem:[#allocation9 + $0x7ec] ss:$16 sps:$4 sm:$0xff]  }
 0x1ed   :  { %2467 = vmatpush1.bf16.msra.mxu1 %v3859_v47  ;;  %v3916_v47 = vld [vmem:[#allocation9 + $0x7c8] ss:$16 sps:$4 sm:$0xff]  }
 0x1ee   :  { %2468 = vmatprep.subr.bf16.mxu1 %v3864_v49  ;;  %3007 = vmatpush1.bf16.msra.mxu0 %v3955_v50  ;;  %v3919_v49 = vld [vmem:[#allocation9 + $0x7e8] ss:$16 sps:$4 sm:$0xff]   ;;  %v4376_v50 = vstv %s2526_s27 }
 0x1ef   :  { %3008 = vmatprep.subr.bf16.mxu0 %v3960_v9  ;;  %v2529_v9 = vxor.u32 %v4376_v50, %v4262_v15 }
 0x1f1   :  { %2469 = vmatpush1.bf16.msra.mxu1 %v3862_v52  ;;  %v2528_v52 = vxor.u32 %v4376_v50, %v4257_v13 }
 0x1f2   :  { %2470 = vmatprep.subr.bf16.mxu1 %v3867_v56  ;;  %3009 = vmatpush1.bf16.msra.mxu0 %v3958_v62  ;;  %v2533_v62 = vshrl.u32 %v2529_v9, 16 }
 0x1f3   :  { %v2532_v56 = vshrl.u32 %v2528_v52, 16 }
 0x1f5   :  { %2471 = vmatpush1.bf16.msra.mxu1 %v3865_v58  ;;  %v2536_v58 = vxor.u32 %v2532_v56, %v2528_v52  ;;  %v3994_v52 = vld [vmem:[#allocation10 + $0x180] ss:$8 sps:$4 sm:$0xff]   ;;  %v3997_v56 = vld [vmem:[#allocation10 + $0x190] ss:$8 sps:$4 sm:$0xff]  }
 0x1f6   :  { %2472 = vmatprep.subr.bf16.mxu1 %v3870_v14  ;;  %v2537_v14 = vxor.u32 %v2533_v62, %v2529_v9  ;;  %v3999_v9 = vld [vmem:[#allocation10 + $0x194] ss:$8 sps:$4 sm:$0xff]   ;;  %v4002_v62 = vld [vmem:[#allocation10 + $0x1a4] ss:$8 sps:$4 sm:$0xff]  }
 0x1f9   :  { %2473 = vmatpush1.bf16.msra.mxu1 %v3868_v60  ;;  %v2540_v60 = vmul.u32 2146121005, %v2536_v58  ;;  %v4000_v58 = vld [vmem:[#allocation10 + $0x1a0] ss:$8 sps:$4 sm:$0xff]  }
 0x1fa   :  { %2474 = vmatprep.subr.bf16.mxu1 %v3873_v61  ;;  %v2541_v61 = vmul.u32 2146121005, %v2537_v14  ;;  %v4005_v14 = vld [vmem:[#allocation10 + $0x1b4] ss:$8 sps:$4 sm:$0xff]  }
 0x1fd   :  { %2475 = vmatpush1.bf16.msra.mxu1 %v3871_v63  ;;  %v2544_v63 = vshrl.u32 %v2540_v60, 15 }
 0x1fe   :  { %2485 = vmatprep.subr.bf16.mxu1 %v3876_v0 }
 0x1ff   :  { %v2548_v0 = vxor.u32 %v2544_v63, %v2540_v60  ;;  %v4003_v60 = vld [vmem:[#allocation10 + $0x1b0] ss:$8 sps:$4 sm:$0xff]   ;;  %v4006_v63 = vld [vmem:[#allocation10 + $0x1c0] ss:$8 sps:$4 sm:$0xff]  }
 0x200   :  { %2477 = vmatmul.mubr.bf16.vlgmr.msra.gmra.mrb[12].mxu1 %v4346_v20  ;;  %v3889_v20 = vld [vmem:[#allocation9 + $0x6a8] ss:$16 sps:$4 sm:$0xff]  }
 0x201   :  { %2486 = vmatpush1.bf16.msra.mxu1 %v3874_v2  ;;  %2517 = vmatprep.mubr.bf16.mxu1 %v4349_v25  ;;  %v3963_v25 = vld [vmem:[#allocation10 + $0xd4] ss:$8 sps:$4 sm:$0xff]  }
 0x202   :  { %2487 = vmatprep.subr.bf16.mxu1 %v3879_v11  ;;  %3010 = vmatprep.subr.bf16.mxu0 %v3963_v25  ;;  %v2552_v11 = vmul.u32 2221713035, %v2548_v0  ;;  %v4009_v0 = vld [vmem:[#allocation10 + $0x1d0] ss:$8 sps:$4 sm:$0xff]  }
 0x203   :  { %3011 = vmatpush1.bf16.msra.mxu0 %v3961_v21 }
 0x204   :  { %3012 = vmatprep.subr.bf16.mxu0 %v3966_v29 }
 0x205   :  { %2488 = vmatpush1.bf16.msra.mxu1 %v3877_v3 }
 0x206   :  { %2489 = vmatprep.subr.bf16.mxu1 %v3882_v41  ;;  %v4385_v41 = vld [vmem:[%s4432_s5] sm:$0xf] }
 0x207   :  { %3013 = vmatpush1.bf16.msra.mxu0 %v3964_v30 }
 0x208   :  { %3014 = vmatprep.subr.bf16.mxu0 %v3969_v33 }
 0x209   :  { %2490 = vmatpush1.bf16.msra.mxu1 %v3880_v4  ;;  %v2556_v4 = vshrl.u32 %v2552_v11, 16 }
 0x20a   :  { %2491 = vmatprep.subr.bf16.mxu1 %v3885_v5  ;;  %v901_v5 = vrot.slane %v4385_v41, %v4282_v51 }
 0x20b   :  { %3015 = vmatpush1.bf16.msra.mxu0 %v3967_v34 }
 0x20c   :  { %3025 = vmatprep.subr.bf16.mxu0 %v3972_v45  ;;  %v3973_v45 = vld [vmem:[#allocation10 + $0x110] ss:$8 sps:$4 sm:$0xff]  }
 0x20d   :  { %2492 = vmatpush1.bf16.msra.mxu1 %v3883_v6 }
 0x20e   :  { %2493 = vmatprep.subr.bf16.mxu1 %v3888_v10  ;;  %v905_v10 = vrot.slane %v4385_v41, %v4291_v55 }
 0x211   :  { %2494 = vmatpush1.bf16.msra.mxu1 %v3886_v31  ;;  %v2560_v31 = vxor.u32 %v2556_v4, %v2552_v11  ;;  %v4012_v11 = vld [vmem:[#allocation10 + $0x1e0] ss:$8 sps:$4 sm:$0xff]   ;;  %v4015_v4 = vld [vmem:[#allocation10 + $0x1f0] ss:$8 sps:$4 sm:$0xff]  }
 0x212   :  { %2495 = vmatprep.subr.bf16.mxu1 %v3891_v12 }
 0x213   :  { %v4368_v19 = vpop.f32.mrb[8].mxu1  ;;  %vm2564_vm1 = vcmp.ge.u32.totalorder %v2560_v31, 1288490189 }
 0x214   :  { %v4370_v22 = vpop.f32.mrb[9].mxu1  ;;  %v2233_v12 = vadd.f32 %v4368_v19, %v901_v5  ;;  %v2530_v5 = vxor.u32 %v4376_v50, %v4268_v17  ;;  %v909_v17 = vrot.slane %v4385_v41, %v138_v54 }
 0x215   :  { %2496 = vmatpush1.bf16.msra.mxu1 %v3889_v20  ;;  %v2236_v23 = vpop.f32.mrb[10].mxu1 }
 0x216   :  { %v2237_v27 = vpop.f32.mrb[11].mxu1  ;;  %2497 = vmatprep.subr.bf16.mxu1 %v3894_v18  ;;  %v2235_v18 = vadd.f32 %v4370_v22, %v905_v10  ;;  %v3970_v22 = vld [vmem:[#allocation10 + $0x100] ss:$8 sps:$4 sm:$0xff]   ;;  %v2534_v10 = vshrl.u32 %v2530_v5, 16 }
 0x219   :  { %2498 = vmatpush1.bf16.msra.mxu1 %v3892_v24 }
 0x21a   :  { %2499 = vmatprep.subr.bf16.mxu1 %v3897_v28 }
 0x21d   :  { %2500 = vmatpush1.bf16.msra.mxu1 %v3895_v32 }
 0x21e   :  { %2501 = vmatprep.subr.bf16.mxu1 %v3900_v44 }
 0x221   :  { %2502 = vmatpush1.bf16.msra.mxu1 %v3898_v35 }
 0x222   :  { %2503 = vmatprep.subr.bf16.mxu1 %v3903_v36  ;;  %v3975_v36 = vld [vmem:[#allocation10 + $0x114] ss:$8 sps:$4 sm:$0xff]  }
 0x225   :  { %2504 = vmatpush1.bf16.msra.mxu1 %v3901_v37  ;;  %v3978_v37 = vld [vmem:[#allocation10 + $0x124] ss:$8 sps:$4 sm:$0xff]  }
 0x226   :  { %2505 = vmatprep.subr.bf16.mxu1 %v3906_v38  ;;  %v3976_v38 = vld [vmem:[#allocation10 + $0x120] ss:$8 sps:$4 sm:$0xff]  }
 0x229   :  { %2506 = vmatpush1.bf16.msra.mxu1 %v3904_v53  ;;  %v3981_v53 = vld [vmem:[#allocation10 + $0x134] ss:$8 sps:$4 sm:$0xff]  }
 0x22a   :  { %2507 = vmatprep.subr.bf16.mxu1 %v3909_v39  ;;  %v3979_v39 = vld [vmem:[#allocation10 + $0x130] ss:$8 sps:$4 sm:$0xff]  }
 0x22d   :  { %2508 = vmatpush1.bf16.msra.mxu1 %v3907_v40  ;;  %v3984_v40 = vld [vmem:[#allocation10 + $0x144] ss:$8 sps:$4 sm:$0xff]  }
 0x22e   :  { %2509 = vmatprep.subr.bf16.mxu1 %v3912_v42  ;;  %v3982_v42 = vld [vmem:[#allocation10 + $0x140] ss:$8 sps:$4 sm:$0xff]  }
 0x231   :  { %2510 = vmatpush1.bf16.msra.mxu1 %v3910_v43  ;;  %v3987_v43 = vld [vmem:[#allocation10 + $0x154] ss:$8 sps:$4 sm:$0xff]  }
 0x232   :  { %2511 = vmatprep.subr.bf16.mxu1 %v3915_v1  ;;  %v3985_v1 = vld [vmem:[#allocation10 + $0x150] ss:$8 sps:$4 sm:$0xff]  }
 0x235   :  { %2512 = vmatpush1.bf16.msra.mxu1 %v3913_v46  ;;  %v3990_v46 = vld [vmem:[#allocation10 + $0x164] ss:$8 sps:$4 sm:$0xff]  }
 0x236   :  { %2513 = vmatprep.subr.bf16.mxu1 %v3918_v8  ;;  %v3988_v8 = vld [vmem:[#allocation10 + $0x160] ss:$8 sps:$4 sm:$0xff]  }
 0x239   :  { %2514 = vmatpush1.bf16.msra.mxu1 %v3916_v47  ;;  %v3993_v47 = vld [vmem:[#allocation10 + $0x174] ss:$8 sps:$4 sm:$0xff]  }
 0x23a   :  { %2515 = vmatprep.subr.bf16.mxu1 %v3921_v48  ;;  %v3991_v48 = vld [vmem:[#allocation10 + $0x170] ss:$8 sps:$4 sm:$0xff]  }
 0x23d   :  { %2516 = vmatpush1.bf16.msra.mxu1 %v3919_v49  ;;  %v3996_v49 = vld [vmem:[#allocation10 + $0x184] ss:$8 sps:$4 sm:$0xff]  }
 0x240   :  { %2518 = vmatmul.mubr.bf16.vlgmr.msra.gmra.mrb[12].mxu1 %v4361_v57  ;;  %v2545_v57 = vshrl.u32 %v2541_v61, 15 }
 0x242   :  { %v2549_v2 = vxor.u32 %v2545_v57, %v2541_v61  ;;  %v4008_v61 = vld [vmem:[#allocation10 + $0x1c4] ss:$8 sps:$4 sm:$0xff]   ;;  %v4011_v57 = vld [vmem:[#allocation10 + $0x1d4] ss:$8 sps:$4 sm:$0xff]  }
 0x244   :  { %v2553_v3 = vmul.u32 2221713035, %v2549_v2  ;;  %v4014_v2 = vld [vmem:[#allocation10 + $0x1e4] ss:$8 sps:$4 sm:$0xff]  }
 0x246   :  { %v2557_v6 = vshrl.u32 %v2553_v3, 16 }
 0x248   :  { %v2561_v20 = vxor.u32 %v2557_v6, %v2553_v3  ;;  %v4017_v3 = vld [vmem:[#allocation10 + $0x1f4] ss:$8 sps:$4 sm:$0xff]   ;;  %v2531_v6 = vxor.u32 %v4376_v50, %v4265_v16  ;;  %v913_v16 = vrot.slane %v4385_v41, %v142_v59 }
 0x24a   :  { %vm2565_vm3 = vcmp.ge.u32.totalorder %v2561_v20, 1288490189  ;;  %v2535_v31 = vshrl.u32 %v2531_v6, 16 }
 0x24c   :  { %v2539_v20 = vxor.u32 %v2535_v31, %v2531_v6 }
 0x293   :  { %v2355_v25 = vpop.f32.mrb[8].mxu0 }
 0x294   :  { %v3495_v21 = vadd.f32 %v2355_v25, %v2233_v12  ;;  %v2357_v23 = vpop.f32.mrb[9].mxu0  ;;  %v2538_v12 = vxor.u32 %v2534_v10, %v2530_v5  ;;  %v2543_v25 = vmul.u32 2146121005, %v2539_v20 }
 0x295   :  { %v3497_v24 = vadd.f32 %v2357_v23, %v2235_v18  ;;  %v2359_v27 = vpop.f32.mrb[10].mxu0 }
 0x296   :  { %vm2568_vm2 = vcmp.ge.f32.partialorder %v3495_v21, 0.0  ;;  %v2360_v28 = vpop.f32.mrb[11].mxu0  ;;  %v2542_v18 = vmul.u32 2146121005, %v2538_v12  ;;  %v2547_v23 = vshrl.u32 %v2543_v25, 15 }
 0x297   :  { %v2572_v29 = vsel %vm2568_vm2, 1.4285715, %v4127_v26  ;;  %vm2569_vm4 = vcmp.ge.f32.partialorder %v3497_v24, 0.0 }
 0x298   :  { %v2576_v30 = vsel %vm2564_vm1, %v2572_v29, 0.0  ;;  %v2573_v32 = vsel %vm2569_vm4, 1.4285715, %v4127_v26  ;;  %v2551_v27 = vxor.u32 %v2547_v23, %v2543_v25 }
 0x299   :  { %v2580_v44 = vmul.f32 %v3495_v21, %v2576_v30  ;;  %v2577_v19 = vsel %vm2565_vm3, %v2573_v32, 0.0  ;;  %v2546_v21 = vshrl.u32 %v2542_v18, 15 }
 0x29a   :  { %v2581_v33 = vmul.f32 %v3497_v24, %v2577_v19  ;;  %v2555_v29 = vmul.u32 2221713035, %v2551_v27 }
 0x29b   :  { %v2584_v35 = vpack.c.bf16 %v2580_v44, %v2580_v44  ;;  %v2550_v24 = vxor.u32 %v2546_v21, %v2542_v18 }
 0x29c   :  { %v2585_v34 = vpack.c.bf16 %v2581_v33, %v2581_v33  ;;  %v2559_v32 = vshrl.u32 %v2555_v29, 16 }
 0x29d   :  { %v2554_v28 = vmul.u32 2221713035, %v2550_v24 }
 0x29e   :  { %3016 = vmatprep.mubr.bf16.mxu0 %v2585_v34  ;;  %v2563_v50 = vxor.u32 %v2559_v32, %v2555_v29  ;;  %v3492_v29 = vld [vmem:[#allocation4] ss:$0 sm:$0xff] }
 0x29f   :  { %3017 = vmatmul.mubr.bf16.vlgmr.msra.gmra.mrb[12].mxu0 %v2584_v35  ;;  %v2558_v30 = vshrl.u32 %v2554_v28, 16 }
 0x2a0   :  { %3026 = vmatpush1.bf16.msra.mxu0 %v3970_v22  ;;  %vm2567_vm7 = vcmp.ge.u32.totalorder %v2563_v50, 1288490189 }
 0x2a1   :  { %3027 = vmatprep.subr.bf16.mxu0 %v3975_v36  ;;  %v2562_v44 = vxor.u32 %v2558_v30, %v2554_v28 }
 0x2a3   :  { %vm2566_vm5 = vcmp.ge.u32.totalorder %v2562_v44, 1288490189 }
 0x2a4   :  { %3028 = vmatpush1.bf16.msra.mxu0 %v3973_v45 }
 0x2a5   :  { %3029 = vmatprep.subr.bf16.mxu0 %v3978_v37 }
 0x2a8   :  { %3030 = vmatpush1.bf16.msra.mxu0 %v3976_v38 }
 0x2a9   :  { %3031 = vmatprep.subr.bf16.mxu0 %v3981_v53 }
 0x2ac   :  { %3032 = vmatpush1.bf16.msra.mxu0 %v3979_v39  ;;  %v3067_v39 = vstv %s3066_s30 }
 0x2ad   :  { %3033 = vmatprep.subr.bf16.mxu0 %v3984_v40  ;;  %v3068_v40 = vxor.u32 %v3067_v39, %v4257_v13 }
 0x2b0   :  { %3034 = vmatpush1.bf16.msra.mxu0 %v3982_v42  ;;  %v3069_v42 = vxor.u32 %v3067_v39, %v4262_v15 }
 0x2b1   :  { %3035 = vmatprep.subr.bf16.mxu0 %v3987_v43  ;;  %v3070_v43 = vshrl.u32 %v3068_v40, 16 }
 0x2b4   :  { %3036 = vmatpush1.bf16.msra.mxu0 %v3985_v1  ;;  %v3071_v1 = vshrl.u32 %v3069_v42, 16 }
 0x2b5   :  { %3037 = vmatprep.subr.bf16.mxu0 %v3990_v46  ;;  %v3072_v46 = vxor.u32 %v3070_v43, %v3068_v40 }
 0x2b8   :  { %3038 = vmatpush1.bf16.msra.mxu0 %v3988_v8  ;;  %v3073_v8 = vxor.u32 %v3071_v1, %v3069_v42 }
 0x2b9   :  { %3039 = vmatprep.subr.bf16.mxu0 %v3993_v47  ;;  %v3074_v47 = vmul.u32 2146121005, %v3072_v46 }
 0x2bc   :  { %3040 = vmatpush1.bf16.msra.mxu0 %v3991_v48  ;;  %v3075_v48 = vmul.u32 2146121005, %v3073_v8 }
 0x2bd   :  { %3041 = vmatprep.subr.bf16.mxu0 %v3996_v49  ;;  %v3076_v49 = vshrl.u32 %v3074_v47, 15 }
 0x2c0   :  { %3042 = vmatpush1.bf16.msra.mxu0 %v3994_v52  ;;  %v3077_v52 = vshrl.u32 %v3075_v48, 15 }
 0x2c1   :  { %3043 = vmatprep.subr.bf16.mxu0 %v3999_v9  ;;  %v3078_v9 = vxor.u32 %v3076_v49, %v3074_v47 }
 0x2c4   :  { %3044 = vmatpush1.bf16.msra.mxu0 %v3997_v56  ;;  %v3079_v56 = vxor.u32 %v3077_v52, %v3075_v48 }
 0x2c5   :  { %3045 = vmatprep.subr.bf16.mxu0 %v4002_v62  ;;  %v3080_v62 = vmul.u32 2221713035, %v3078_v9 }
 0x2c8   :  { %3046 = vmatpush1.bf16.msra.mxu0 %v4000_v58  ;;  %v3081_v58 = vmul.u32 2221713035, %v3079_v56 }
 0x2c9   :  { %3047 = vmatprep.subr.bf16.mxu0 %v4005_v14  ;;  %v2652_v14 = vld [vmem:[%s4434_s7] sm:$0x3] }
 0x2ca   :  { %v3083_v13 = vshrl.u32 %v3081_v58, 16  ;;  %v2657_v15 = vrot.slane %v2652_v14, %v4282_v51 }
 0x2cc   :  { %3048 = vmatpush1.bf16.msra.mxu0 %v4003_v60  ;;  %v3082_v60 = vshrl.u32 %v3080_v62, 16 }
 0x2cd   :  { %3049 = vmatprep.subr.bf16.mxu0 %v4008_v61 }
 0x2ce   :  { %v3084_v61 = vxor.u32 %v3082_v60, %v3080_v62 }
 0x2d0   :  { %3050 = vmatpush1.bf16.msra.mxu0 %v4006_v63  ;;  %v2661_v63 = vrot.slane %v2652_v14, %v4291_v55  ;;  %vm3086_vm9 = vcmp.ge.u32.totalorder %v3084_v61, 1288490189 }
 0x2d1   :  { %3051 = vmatprep.subr.bf16.mxu0 %v4011_v57  ;;  %v3085_v57 = vxor.u32 %v3083_v13, %v3081_v58 }
 0x2d3   :  { %vm3087_vm11 = vcmp.ge.u32.totalorder %v3085_v57, 1288490189 }
 0x2d4   :  { %3052 = vmatpush1.bf16.msra.mxu0 %v4009_v0 }
 0x2d5   :  { %3053 = vmatprep.subr.bf16.mxu0 %v4014_v2 }
 0x2d8   :  { %3054 = vmatpush1.bf16.msra.mxu0 %v4012_v11 }
 0x2d9   :  { %3055 = vmatprep.subr.bf16.mxu0 %v4017_v3  ;;  %v3096_v3 = vld [vmem:[%s4435_s8] sm:$0x3] }
 0x2da   :  { %v3101_v31 = vrot.slane %v3096_v3, %v4282_v51  ;;  %v3105_v18 = vrot.slane %v3096_v3, %v4291_v55 }
 0x2dc   :  { %3056 = vmatpush1.bf16.msra.mxu0 %v4015_v4 }
 0x313   :  { %v2519_v19 = vpop.f32.mrb[12].mxu1 }
 0x314   :  { %v3498_v33 = vadd.f32 %v2519_v19, %v909_v17  ;;  %v2521_v34 = vpop.f32.mrb[13].mxu1 }
 0x315   :  { %v3499_v22 = vadd.f32 %v2521_v34, %v913_v16  ;;  %v2523_v35 = vpop.f32.mrb[14].mxu1 }
 0x316   :  { %vm2570_vm6 = vcmp.ge.f32.partialorder %v3498_v33, 0.0  ;;  %v2524_v36 = vpop.f32.mrb[15].mxu1 }
 0x317   :  { %v2574_v45 = vsel %vm2570_vm6, 1.4285715, %v4127_v26  ;;  %vm2571_vm8 = vcmp.ge.f32.partialorder %v3499_v22, 0.0 }
 0x318   :  { %v2578_v37 = vsel %vm2566_vm5, %v2574_v45, 0.0  ;;  %v2575_v54 = vsel %vm2571_vm8, 1.4285715, %v4127_v26 }
 0x319   :  { %v2582_v38 = vmul.f32 %v3498_v33, %v2578_v37  ;;  %v2579_v7 = vsel %vm2567_vm7, %v2575_v54, 0.0 }
 0x31a   :  { %v2583_v53 = vmul.f32 %v3499_v22, %v2579_v7 }
 0x31b   :  { %v2586_v41 = vpack.c.bf16 %v2582_v38, %v2582_v38 }
 0x31c   :  { %v2587_v59 = vpack.c.bf16 %v2583_v53, %v2583_v53 }
 0x31e   :  { %3057 = vmatprep.mubr.bf16.mxu0 %v2587_v59 }
 0x31f   :  { %3058 = vmatmul.mubr.bf16.vlgmr.msra.gmra.mrb[12].mxu0 %v2586_v41 }
 0x3f2   :  { %v3059_v0 = vpop.f32.mrb[12].mxu0 }
 0x3f3   :  { %v3500_v2 = vadd.f32 %v3059_v0, %v2657_v15  ;;  %v3061_v11 = vpop.f32.mrb[13].mxu0 }
 0x3f4   :  { %v3501_v4 = vadd.f32 %v3061_v11, %v2661_v63  ;;  %v3063_v5 = vpop.f32.mrb[14].mxu0 }
 0x3f5   :  { %vm3088_vm10 = vcmp.ge.f32.partialorder %v3500_v2, 0.0  ;;  %v3064_v6 = vpop.f32.mrb[15].mxu0 }
 0x3f6   :  { %v3090_v10 = vsel %vm3088_vm10, 1.4285715, %v4127_v26  ;;  %vm3089_vm12 = vcmp.ge.f32.partialorder %v3501_v4, 0.0 }
 0x3f7   :  { %v3092_v12 = vsel %vm3086_vm9, %v3090_v10, 0.0  ;;  %v3091_v20 = vsel %vm3089_vm12, 1.4285715, %v4127_v26 }
 0x3f8   :  { %v3094_v25 = vmul.f32 %v3500_v2, %v3092_v12  ;;  %v3093_v21 = vsel %vm3087_vm11, %v3091_v20, 0.0 }
 0x3f9   :  { %v3095_v23 = vmul.f32 %v3501_v4, %v3093_v21 }
 0x3fa   :  { %v3108_v24 = vmul.f32 %v3101_v31, %v3094_v25 }
 0x3fb   :  { %v3109_v27 = vmul.f32 %v3105_v18, %v3095_v23 }
 0x3fd   :  { %v3110_v28 = vadd.f32 %v3109_v27, %v3108_v24 }
 0x3ff   :  { %3111 = vadd.xlane.f32.xlu0 %v3110_v28 }
 0x48c   :  { %v3112_v30 = vpop.xlane.xlu0 %3111 }
 0x48d   :  { %v3120_v32 = vadd.f32 %v3492_v29, %v3112_v30 }
 0x48f   :  { %v3493_v17 = vmul.f32 -1.442695, %v3120_v32 }
 0x491   :  { %4018 = vpow2.f32 %v3493_v17 }
 0x49b   :  { %v4019_v44 = vpop.eup %4018 }
 0x49c   :  { %v3124_v16 = vadd.f32 1.0, %v4019_v44 }
 0x49e   :  { %4020 = vrcp.f32 %v3124_v16 }
 0x4a8   :  { %v4021_v51 = vpop.eup %4020 }
 0x4a9   :  { %3128 = vst.msk [vmem:[%s4437_s10] sm:$0xff] %vm3127_vm13, %v4021_v51 }
 0x4aa   :  { %3133 = vsyncpa [#allocation6], 1 }
 0x4ab   :  { %3134 = vsyncpa [#allocation8], 1 }
 0x4ac   :  { %3135 = vsyncpa [#allocation11], 1 }

</bundles_post_ra>
